<compile_context>
chip_gen: v7x
topology: tpu7x:2x2x1
jax: 0.10.0
libtpu: 0.0.40
codegen_flags: <defaults>
</compile_context>

<pallas_src>
import math
import time

import jax
import jax.numpy as jnp
from jax.experimental import pallas as pl
from jax.experimental.pallas import tpu as pltpu

FIELD_SIZE = 16
HIDDEN = 256                      # multiple of 128 -> lane-dense
D_IN = 2 * FIELD_SIZE * FIELD_SIZE
LN_EPS = 1e-5
_SQRT2 = math.sqrt(2.0)
H = HIDDEN


def _gelu(x):
    # exact (erf) GELU, matching torch.nn.GELU() default, evaluated in fp32
    return 0.5 * x * (1.0 + jax.lax.erf(x / jnp.float32(_SQRT2)))


# ------------------------------------------------------------ fused kernel --

def fused_kernel(x_ref, enc_w_ref, w1_ref, w2_ref, b_ref, out_ref, met_ref):
    # bias slab layout (static lane-aligned offsets, all multiples of 256)
    enc_b = b_ref[:, 0 * H:1 * H]
    ln_g  = b_ref[:, 1 * H:2 * H]
    ln_b  = b_ref[:, 2 * H:3 * H]
    b1    = b_ref[:, 3 * H:7 * H]      # [vp_b1 | lp_b1 | l2v_bv | v2l_bv]
    b2    = b_ref[:, 7 * H:11 * H]     # [vp_b2 | lp_b2 | l2v_bo | v2l_bo]

    # -- shared encoder, both modalities batched through one matmul ----------
    x = x_ref[...]                                                 # (2, D_IN) bf16
    h = jnp.dot(x, enc_w_ref[...], preferred_element_type=jnp.float32) + enc_b
    h = _gelu(h)
    mu = jnp.mean(h, axis=-1, keepdims=True)
    var = jnp.mean((h - mu) ** 2, axis=-1, keepdims=True)
    enc = (h - mu) * jax.lax.rsqrt(var + LN_EPS) * ln_g + ln_b     # (2, H) fp32
    # row 0 = vis_encoded, row 1 = lang_encoded

    # -- stage 1: one wide matmul against [vp_w1 | lp_w1 | l2v_wv | v2l_wv] --
    s1 = jnp.dot(enc.astype(jnp.bfloat16), w1_ref[...],
                 preferred_element_type=jnp.float32) + b1          # (2, 4H)
    t_vp  = _gelu(s1[1:2, 0 * H:1 * H])   # visual_predictor hidden (input=lang)
    t_lp  = _gelu(s1[0:1, 1 * H:2 * H])   # language_predictor hidden (input=vis)
    v_l2v = s1[1:2, 2 * H:3 * H]          # language_to_visual v_proj(lang)
    v_v2l = s1[0:1, 3 * H:4 * H]          # visual_to_language v_proj(vis)

    # -- stage 2: one matmul vs [vp_w2 | lp_w2 | l2v_wo | v2l_wo], diag blocks
    lhs = jnp.concatenate([t_vp, t_lp, v_l2v, v_v2l],
                          axis=0).astype(jnp.bfloat16)             # (4, H)
    s2 = jnp.dot(lhs, w2_ref[...], preferred_element_type=jnp.float32) + b2
    pred_vis  = s2[0:1, 0 * H:1 * H]      # visual_predictor(lang_encoded)
    pred_lang = s2[1:2, 1 * H:2 * H]      # language_predictor(vis_encoded)
    l2v       = s2[2:3, 2 * H:3 * H]      # out_proj(v_proj(lang))  == MHA output
    v2l       = s2[3:4, 3 * H:4 * H]      # out_proj(v_proj(vis))   == MHA output

    # -- prediction errors / coupling strength (clamp BEFORE cs, as in torch)
    d_v = pred_vis - enc[1:2, :]
    d_l = pred_lang - enc[0:1, :]
    ve = jnp.clip(jnp.mean(d_v * d_v), 0.0, 1.0)
    le = jnp.clip(jnp.mean(d_l * d_l), 0.0, 1.0)
    cs = 1.0 / (1.0 + ve + le)

    # -- single (2, H) output block: row 0 = lang_to_vis, row 1 = vis_to_lang
    out_ref[...] = jnp.concatenate([l2v, v2l], axis=0) * cs

    # -- scalar metrics (1-D SMEM) --------------------------------------------
    met_ref[0] = ve
    met_ref[1] = le
    met_ref[2] = cs
    met_ref[3] = jnp.float32(1.0)   # lang attention-weight mean (softmax over L=1)
    met_ref[4] = jnp.float32(1.0)   # vis attention-weight mean
    met_ref[5] = jnp.float32(0.0)
    met_ref[6] = jnp.float32(0.0)
    met_ref[7] = jnp.float32(0.0)


_fused = pl.pallas_call(
    fused_kernel,
    out_shape=(jax.ShapeDtypeStruct((2, HIDDEN), jnp.float32),
               jax.ShapeDtypeStruct((8,), jnp.float32)),
    in_specs=[pl.BlockSpec(memory_space=pltpu.MemorySpace.VMEM)] * 5,
    out_specs=(pl.BlockSpec(memory_space=pltpu.MemorySpace.VMEM),
               pl.BlockSpec(memory_space=pltpu.MemorySpace.SMEM)),
)


# ----------------------------------------------------------------- params ---

def init_params(key):
    ks = jax.random.split(key, 9)

    def lin(k, fan_in, fan_out):
        kw, kb = jax.random.split(k)
        bound = 1.0 / math.sqrt(fan_in)
        w = jax.random.uniform(kw, (fan_in, fan_out), jnp.float32, -bound, bound)
        b = jax.random.uniform(kb, (fan_out,), jnp.float32, -bound, bound)
        return w, b

    # visual_encoder (used for both modalities, as in the PyTorch forward)
    enc_w, enc_b = lin(ks[0], D_IN, HIDDEN)
    ln_g = jnp.ones((HIDDEN,), jnp.float32)
    ln_b = jnp.zeros((HIDDEN,), jnp.float32)
    # predictors
    vp_w1, vp_b1 = lin(ks[1], HIDDEN, HIDDEN)
    vp_w2, vp_b2 = lin(ks[2], HIDDEN, HIDDEN)
    lp_w1, lp_b1 = lin(ks[3], HIDDEN, HIDDEN)
    lp_w2, lp_b2 = lin(ks[4], HIDDEN, HIDDEN)
    # multi-head attention: q/k projections provably cannot affect the output
    # (softmax over a length-1 key axis) -> only v/out projections are kept.
    l2v_wv, l2v_bv = lin(ks[5], HIDDEN, HIDDEN)
    l2v_wo, l2v_bo = lin(ks[6], HIDDEN, HIDDEN)
    v2l_wv, v2l_bv = lin(ks[7], HIDDEN, HIDDEN)
    v2l_wo, v2l_bo = lin(ks[8], HIDDEN, HIDDEN)

    return {
        "enc_w": enc_w.astype(jnp.bfloat16),
        # pre-concatenated weight slabs (bf16, lane-dense N = 1024)
        "w1_cat": jnp.concatenate([vp_w1, lp_w1, l2v_wv, v2l_wv],
                                  axis=1).astype(jnp.bfloat16),
        "w2_cat": jnp.concatenate([vp_w2, lp_w2, l2v_wo, v2l_wo],
                                  axis=1).astype(jnp.bfloat16),
        # single fp32 bias/LN slab, sliced with static offsets in-kernel
        "bias": jnp.concatenate(
            [enc_b, ln_g, ln_b,
             vp_b1, lp_b1, l2v_bv, v2l_bv,
             vp_b2, lp_b2, l2v_bo, v2l_bo]).reshape(1, 11 * HIDDEN),
    }


# ---------------------------------------------------------------- wrapper ---

@jax.jit
def _forward_device(params, vis_mag, vis_ph, lang_mag, lang_ph):
    # flatten / stack / bf16 cast all happen under jit (no eager dispatches)
    x2 = jnp.stack([
        jnp.concatenate([vis_mag.reshape(-1), vis_ph.reshape(-1)]),
        jnp.concatenate([lang_mag.reshape(-1), lang_ph.reshape(-1)]),
    ]).astype(jnp.bfloat16)                                        # (2, D_IN)
    out2, met = _fused(x2, params["enc_w"], params["w1_cat"],
                       params["w2_cat"], params["bias"])
    return out2[0:1, :], out2[1:2, :], met


def forward(params, visual_state, language_state, device_metrics=False):
    lang_to_vis, vis_to_lang, met = _forward_device(
        params,
        visual_state["magnitude"], visual_state["phase"],
        language_state["magnitude"], language_state["phase"])
    if device_metrics:
        # defer the host sync: caller converts the (8,) array at log time
        return lang_to_vis, vis_to_lang, met
    met_host = jax.device_get(met)                                # single host sync
    metrics = {
        "visual_prediction_error": float(met_host[0]),
        "language_prediction_error": float(met_host[1]),
        "coupling_strength": float(met_host[2]),
        "lang_attention_mean": float(met_host[3]),
        "vis_attention_mean": float(met_host[4]),
        "timestamp": time.time(),
    }
    return lang_to_vis, vis_to_lang, metrics


# ------------------------------------------------------------------- main ---

if __name__ == "__main__":
    key = jax.random.PRNGKey(0)
    kp, kd = jax.random.split(key)
    params = init_params(kp)

    k1, k2, k3, k4 = jax.random.split(kd, 4)
    visual_state = {
        "magnitude": jax.random.normal(k1, (FIELD_SIZE, FIELD_SIZE), jnp.float32),
        "phase": jax.random.normal(k2, (FIELD_SIZE, FIELD_SIZE), jnp.float32),
    }
    language_state = {
        "magnitude": jax.random.normal(k3, (FIELD_SIZE, FIELD_SIZE), jnp.float32),
        "phase": jax.random.normal(k4, (FIELD_SIZE, FIELD_SIZE), jnp.float32),
    }

    lang_to_vis, vis_to_lang, metrics = forward(params, visual_state, language_state)
    jax.block_until_ready((lang_to_vis, vis_to_lang))

    assert lang_to_vis.shape == (1, HIDDEN)
    assert vis_to_lang.shape == (1, HIDDEN)
    assert 0.0 < metrics["coupling_strength"] <= 1.0
    assert 0.0 <= metrics["visual_prediction_error"] <= 1.0
    assert 0.0 <= metrics["language_prediction_error"] <= 1.0
    assert metrics["lang_attention_mean"] == 1.0
    assert metrics["vis_attention_mean"] == 1.0
    print("KERNEL_OK")
</pallas_src>

<mosaic_0001>
module attributes {stable_mosaic.version = 11 : i64} {
  func.func @fused_kernel(%arg0: memref<2x512xbf16, #tpu.memory_space<vmem>>, %arg1: memref<512x256xbf16, #tpu.memory_space<vmem>>, %arg2: memref<256x1024xbf16, #tpu.memory_space<vmem>>, %arg3: memref<256x1024xbf16, #tpu.memory_space<vmem>>, %arg4: memref<1x2816xf32, #tpu.memory_space<vmem>>, %arg5: memref<2x256xf32, #tpu.memory_space<vmem>>, %arg6: memref<8xf32, #tpu.memory_space<smem>>) attributes {dimension_semantics = [], scalar_prefetch = 0 : i64, scratch_operands = 0 : i64, tpu.core_type = #tpu.core_type<tc>} {
    %c0 = arith.constant 0 : index
    %c0_0 = arith.constant 0 : index
    %0 = vector.load %arg4[%c0, %c0_0] : memref<1x2816xf32, #tpu.memory_space<vmem>>, vector<1x256xf32>
    %c0_1 = arith.constant 0 : index
    %c256 = arith.constant 256 : index
    %1 = vector.load %arg4[%c0_1, %c256] : memref<1x2816xf32, #tpu.memory_space<vmem>>, vector<1x256xf32>
    %c0_2 = arith.constant 0 : index
    %c512 = arith.constant 512 : index
    %2 = vector.load %arg4[%c0_2, %c512] : memref<1x2816xf32, #tpu.memory_space<vmem>>, vector<1x256xf32>
    %c0_3 = arith.constant 0 : index
    %c768 = arith.constant 768 : index
    %3 = vector.load %arg4[%c0_3, %c768] : memref<1x2816xf32, #tpu.memory_space<vmem>>, vector<1x1024xf32>
    %c0_4 = arith.constant 0 : index
    %c1792 = arith.constant 1792 : index
    %4 = vector.load %arg4[%c0_4, %c1792] : memref<1x2816xf32, #tpu.memory_space<vmem>>, vector<1x1024xf32>
    %c0_5 = arith.constant 0 : index
    %c0_6 = arith.constant 0 : index
    %5 = vector.load %arg0[%c0_5, %c0_6] : memref<2x512xbf16, #tpu.memory_space<vmem>>, vector<2x512xbf16>
    %c0_7 = arith.constant 0 : index
    %c0_8 = arith.constant 0 : index
    %6 = vector.load %arg1[%c0_7, %c0_8] : memref<512x256xbf16, #tpu.memory_space<vmem>>, vector<512x256xbf16>
    %cst = arith.constant dense<0.000000e+00> : vector<2x256xf32>
    %7 = tpu.matmul %5, %6, %cst {dimension_numbers = #tpu.dot_dimension_numbers<[1], [0], [0], [1], [0, 0, 1, 1], [], []>} : vector<2x512xbf16>, vector<512x256xbf16>, vector<2x256xf32> -> vector<2x256xf32>
    %8 = vector.broadcast %0 : vector<1x256xf32> to vector<2x256xf32>
    %9 = arith.addf %7, %8 : vector<2x256xf32>
    %cst_9 = arith.constant 5.000000e-01 : f32
    %10 = vector.broadcast %cst_9 : f32 to vector<2x256xf32>
    %11 = arith.mulf %10, %9 : vector<2x256xf32>
    %cst_10 = arith.constant 1.41421354 : f32
    %12 = vector.broadcast %cst_10 : f32 to vector<2x256xf32>
    %13 = arith.divf %9, %12 : vector<2x256xf32>
    %14 = math.erf %13 : vector<2x256xf32>
    %cst_11 = arith.constant 1.000000e+00 : f32
    %15 = vector.broadcast %cst_11 : f32 to vector<2x256xf32>
    %16 = arith.addf %15, %14 : vector<2x256xf32>
    %17 = arith.mulf %11, %16 : vector<2x256xf32>
    %cst_12 = arith.constant dense<0.000000e+00> : vector<2xf32>
    %18 = vector.multi_reduction <add>, %17, %cst_12 [1] : vector<2x256xf32> to vector<2xf32>
    %19 = vector.shape_cast %18 : vector<2xf32> to vector<2x1xf32>
    %cst_13 = arith.constant 2.560000e+02 : f32
    %20 = vector.broadcast %cst_13 : f32 to vector<2x1xf32>
    %21 = arith.divf %19, %20 : vector<2x1xf32>
    %22 = vector.broadcast %21 : vector<2x1xf32> to vector<2x256xf32>
    %23 = arith.subf %17, %22 : vector<2x256xf32>
    %24 = arith.mulf %23, %23 : vector<2x256xf32>
    %cst_14 = arith.constant dense<0.000000e+00> : vector<2xf32>
    %25 = vector.multi_reduction <add>, %24, %cst_14 [1] : vector<2x256xf32> to vector<2xf32>
    %26 = vector.shape_cast %25 : vector<2xf32> to vector<2x1xf32>
    %cst_15 = arith.constant 2.560000e+02 : f32
    %27 = vector.broadcast %cst_15 : f32 to vector<2x1xf32>
    %28 = arith.divf %26, %27 : vector<2x1xf32>
    %29 = vector.broadcast %21 : vector<2x1xf32> to vector<2x256xf32>
    %30 = arith.subf %17, %29 : vector<2x256xf32>
    %cst_16 = arith.constant 9.99999974E-6 : f32
    %31 = vector.broadcast %cst_16 : f32 to vector<2x1xf32>
    %32 = arith.addf %28, %31 : vector<2x1xf32>
    %33 = math.rsqrt %32 : vector<2x1xf32>
    %34 = vector.broadcast %33 : vector<2x1xf32> to vector<2x256xf32>
    %35 = arith.mulf %30, %34 : vector<2x256xf32>
    %36 = vector.broadcast %1 : vector<1x256xf32> to vector<2x256xf32>
    %37 = arith.mulf %35, %36 : vector<2x256xf32>
    %38 = vector.broadcast %2 : vector<1x256xf32> to vector<2x256xf32>
    %39 = arith.addf %37, %38 : vector<2x256xf32>
    %40 = arith.truncf %39 : vector<2x256xf32> to vector<2x256xbf16>
    %c0_17 = arith.constant 0 : index
    %c0_18 = arith.constant 0 : index
    %41 = vector.load %arg2[%c0_17, %c0_18] : memref<256x1024xbf16, #tpu.memory_space<vmem>>, vector<256x1024xbf16>
    %cst_19 = arith.constant dense<0.000000e+00> : vector<2x1024xf32>
    %42 = tpu.matmul %40, %41, %cst_19 {dimension_numbers = #tpu.dot_dimension_numbers<[1], [0], [0], [1], [0, 0, 1, 1], [], []>} : vector<2x256xbf16>, vector<256x1024xbf16>, vector<2x1024xf32> -> vector<2x1024xf32>
    %43 = vector.broadcast %3 : vector<1x1024xf32> to vector<2x1024xf32>
    %44 = arith.addf %42, %43 : vector<2x1024xf32>
    %45 = vector.extract_strided_slice %44 {offsets = [1, 0], sizes = [1, 256], strides = [1, 1]} : vector<2x1024xf32> to vector<1x256xf32>
    %cst_20 = arith.constant 5.000000e-01 : f32
    %46 = vector.broadcast %cst_20 : f32 to vector<1x256xf32>
    %47 = arith.mulf %46, %45 : vector<1x256xf32>
    %cst_21 = arith.constant 1.41421354 : f32
    %48 = vector.broadcast %cst_21 : f32 to vector<1x256xf32>
    %49 = arith.divf %45, %48 : vector<1x256xf32>
    %50 = math.erf %49 : vector<1x256xf32>
    %cst_22 = arith.constant 1.000000e+00 : f32
    %51 = vector.broadcast %cst_22 : f32 to vector<1x256xf32>
    %52 = arith.addf %51, %50 : vector<1x256xf32>
    %53 = arith.mulf %47, %52 : vector<1x256xf32>
    %54 = vector.extract_strided_slice %44 {offsets = [0, 256], sizes = [1, 256], strides = [1, 1]} : vector<2x1024xf32> to vector<1x256xf32>
    %cst_23 = arith.constant 5.000000e-01 : f32
    %55 = vector.broadcast %cst_23 : f32 to vector<1x256xf32>
    %56 = arith.mulf %55, %54 : vector<1x256xf32>
    %cst_24 = arith.constant 1.41421354 : f32
    %57 = vector.broadcast %cst_24 : f32 to vector<1x256xf32>
    %58 = arith.divf %54, %57 : vector<1x256xf32>
    %59 = math.erf %58 : vector<1x256xf32>
    %cst_25 = arith.constant 1.000000e+00 : f32
    %60 = vector.broadcast %cst_25 : f32 to vector<1x256xf32>
    %61 = arith.addf %60, %59 : vector<1x256xf32>
    %62 = arith.mulf %56, %61 : vector<1x256xf32>
    %63 = vector.extract_strided_slice %44 {offsets = [1, 512], sizes = [1, 256], strides = [1, 1]} : vector<2x1024xf32> to vector<1x256xf32>
    %64 = vector.extract_strided_slice %44 {offsets = [0, 768], sizes = [1, 256], strides = [1, 1]} : vector<2x1024xf32> to vector<1x256xf32>
    %65 = tpu.concatenate %53, %62, %63, %64 in 0 : vector<1x256xf32>, vector<1x256xf32>, vector<1x256xf32>, vector<1x256xf32> -> vector<4x256xf32>
    %66 = arith.truncf %65 : vector<4x256xf32> to vector<4x256xbf16>
    %c0_26 = arith.constant 0 : index
    %c0_27 = arith.constant 0 : index
    %67 = vector.load %arg3[%c0_26, %c0_27] : memref<256x1024xbf16, #tpu.memory_space<vmem>>, vector<256x1024xbf16>
    %cst_28 = arith.constant dense<0.000000e+00> : vector<4x1024xf32>
    %68 = tpu.matmul %66, %67, %cst_28 {dimension_numbers = #tpu.dot_dimension_numbers<[1], [0], [0], [1], [0, 0, 1, 1], [], []>} : vector<4x256xbf16>, vector<256x1024xbf16>, vector<4x1024xf32> -> vector<4x1024xf32>
    %69 = vector.broadcast %4 : vector<1x1024xf32> to vector<4x1024xf32>
    %70 = arith.addf %68, %69 : vector<4x1024xf32>
    %71 = vector.extract_strided_slice %70 {offsets = [0, 0], sizes = [1, 256], strides = [1, 1]} : vector<4x1024xf32> to vector<1x256xf32>
    %72 = vector.extract_strided_slice %70 {offsets = [1, 256], sizes = [1, 256], strides = [1, 1]} : vector<4x1024xf32> to vector<1x256xf32>
    %73 = vector.extract_strided_slice %70 {offsets = [2, 512], sizes = [1, 256], strides = [1, 1]} : vector<4x1024xf32> to vector<1x256xf32>
    %74 = vector.extract_strided_slice %70 {offsets = [3, 768], sizes = [1, 256], strides = [1, 1]} : vector<4x1024xf32> to vector<1x256xf32>
    %75 = vector.extract_strided_slice %39 {offsets = [1, 0], sizes = [1, 256], strides = [1, 1]} : vector<2x256xf32> to vector<1x256xf32>
    %76 = arith.subf %71, %75 : vector<1x256xf32>
    %77 = vector.extract_strided_slice %39 {offsets = [0, 0], sizes = [1, 256], strides = [1, 1]} : vector<2x256xf32> to vector<1x256xf32>
    %78 = arith.subf %72, %77 : vector<1x256xf32>
    %79 = arith.mulf %76, %76 : vector<1x256xf32>
    %80 = vector.shape_cast %79 : vector<1x256xf32> to vector<1x1x256xf32>
    %cst_29 = arith.constant dense<0.000000e+00> : vector<1xf32>
    %81 = vector.multi_reduction <add>, %80, %cst_29 [1, 2] : vector<1x1x256xf32> to vector<1xf32>
    %82 = vector.shape_cast %81 : vector<1xf32> to vector<1x1x1xf32>
    %83 = vector.extract %82[0, 0, 0] : f32 from vector<1x1x1xf32>
    %cst_30 = arith.constant 2.560000e+02 : f32
    %84 = arith.divf %83, %cst_30 : f32
    %cst_31 = arith.constant 0.000000e+00 : f32
    %cst_32 = arith.constant 1.000000e+00 : f32
    %85 = arith.maximumf %cst_31, %84 : f32
    %86 = arith.minimumf %cst_32, %85 : f32
    %87 = arith.mulf %78, %78 : vector<1x256xf32>
    %88 = vector.shape_cast %87 : vector<1x256xf32> to vector<1x1x256xf32>
    %cst_33 = arith.constant dense<0.000000e+00> : vector<1xf32>
    %89 = vector.multi_reduction <add>, %88, %cst_33 [1, 2] : vector<1x1x256xf32> to vector<1xf32>
    %90 = vector.shape_cast %89 : vector<1xf32> to vector<1x1x1xf32>
    %91 = vector.extract %90[0, 0, 0] : f32 from vector<1x1x1xf32>
    %cst_34 = arith.constant 2.560000e+02 : f32
    %92 = arith.divf %91, %cst_34 : f32
    %cst_35 = arith.constant 0.000000e+00 : f32
    %cst_36 = arith.constant 1.000000e+00 : f32
    %93 = arith.maximumf %cst_35, %92 : f32
    %94 = arith.minimumf %cst_36, %93 : f32
    %cst_37 = arith.constant 1.000000e+00 : f32
    %95 = arith.addf %cst_37, %86 : f32
    %96 = arith.addf %95, %94 : f32
    %cst_38 = arith.constant 1.000000e+00 : f32
    %97 = arith.divf %cst_38, %96 : f32
    %98 = tpu.concatenate %73, %74 in 0 : vector<1x256xf32>, vector<1x256xf32> -> vector<2x256xf32>
    %99 = vector.broadcast %97 : f32 to vector<2x256xf32>
    %100 = arith.mulf %98, %99 : vector<2x256xf32>
    %c0_39 = arith.constant 0 : index
    %c0_40 = arith.constant 0 : index
    %101 = vector.load %arg5[%c0_39, %c0_40] : memref<2x256xf32, #tpu.memory_space<vmem>>, vector<2x256xf32>
    tpu.vector_store %arg5[%c0_39, %c0_40], %100 {strides = array<i32>} : memref<2x256xf32, #tpu.memory_space<vmem>>, vector<2x256xf32>,
    %c0_41 = arith.constant 0 : index
    %102 = memref.load %arg6[%c0_41] : memref<8xf32, #tpu.memory_space<smem>>
    memref.store %86, %arg6[%c0_41] : memref<8xf32, #tpu.memory_space<smem>>
    %c1 = arith.constant 1 : index
    %103 = memref.load %arg6[%c1] : memref<8xf32, #tpu.memory_space<smem>>
    memref.store %94, %arg6[%c1] : memref<8xf32, #tpu.memory_space<smem>>
    %c2 = arith.constant 2 : index
    %104 = memref.load %arg6[%c2] : memref<8xf32, #tpu.memory_space<smem>>
    memref.store %97, %arg6[%c2] : memref<8xf32, #tpu.memory_space<smem>>
    %cst_42 = arith.constant 1.000000e+00 : f32
    %c3 = arith.constant 3 : index
    %105 = memref.load %arg6[%c3] : memref<8xf32, #tpu.memory_space<smem>>
    memref.store %cst_42, %arg6[%c3] : memref<8xf32, #tpu.memory_space<smem>>
    %cst_43 = arith.constant 1.000000e+00 : f32
    %c4 = arith.constant 4 : index
    %106 = memref.load %arg6[%c4] : memref<8xf32, #tpu.memory_space<smem>>
    memref.store %cst_43, %arg6[%c4] : memref<8xf32, #tpu.memory_space<smem>>
    %cst_44 = arith.constant 0.000000e+00 : f32
    %c5 = arith.constant 5 : index
    %107 = memref.load %arg6[%c5] : memref<8xf32, #tpu.memory_space<smem>>
    memref.store %cst_44, %arg6[%c5] : memref<8xf32, #tpu.memory_space<smem>>
    %cst_45 = arith.constant 0.000000e+00 : f32
    %c6 = arith.constant 6 : index
    %108 = memref.load %arg6[%c6] : memref<8xf32, #tpu.memory_space<smem>>
    memref.store %cst_45, %arg6[%c6] : memref<8xf32, #tpu.memory_space<smem>>
    %cst_46 = arith.constant 0.000000e+00 : f32
    %c7 = arith.constant 7 : index
    %109 = memref.load %arg6[%c7] : memref<8xf32, #tpu.memory_space<smem>>
    memref.store %cst_46, %arg6[%c7] : memref<8xf32, #tpu.memory_space<smem>>
    return
  }
}

</mosaic_0001>

<bundles_post_ra>
// kernel: _forward_device.1
= control target key start
LH: loop header
LB: loop body
LE: loop exit
PB: predicated region body
PF: predicated region fallthrough
CT: control target
= control target key end

     0   :  { %12 = vsyncpa [#allocation3], 0  ;;  %s3577_s0 = inlined_call_operand.vmem [shape: bf16[2,512], index: 0, kind: input, shape index: {}]   ;;  %s3578_s1 = inlined_call_operand.hbm [shape: bf16[512,256], index: 1, kind: input, shape index: {}]   ;;  %s3579_s2 = inlined_call_operand.hbm [shape: bf16[256,1024], index: 2, kind: input, shape index: {}]   ;;  %s3580_s3 = inlined_call_operand.hbm [shape: bf16[256,1024], index: 3, kind: input, shape index: {}]   ;;  %s3581_s4 = inlined_call_operand.vmem [shape: f32[1,2816], index: 4, kind: input, shape index: {}]   ;;  %s3582_s5 = inlined_call_operand.vmem [shape: f32[2,256], index: 5, kind: output, shape index: {0}]   ;;  %s3583_s6 = inlined_call_operand.hbm [shape: f32[8], index: 6, kind: output, shape index: {1}]  }
   0x1   :  { %13 = vsyncpa [#allocation6], 0 }
   0x2   :  { %14 = vsyncpa [#allocation4], 0  ;;  %s3303_s21 = smov [#allocation5]   ;;  %s3221_s25 = scalar_lea.hbm %s3579_s2, 16384 }
   0x3   :  { %s34_s22 = sshll.u32 %s3303_s21, 4  ;;  %p3222_p0 = scmp.ne.s32.totalorder %s3579_s2, %s3221_s25  ;;  %s35_s22 = int_to_ptr.vmem [resolvable:$true] %s34_s22 }
   0x4   :  { %p3225_p1 = scmp.lt.u32.totalorder %s3221_s25, %s3579_s2 }
   0x6   :  { %p3227_p2 = pnand %p3225_p1, %p3222_p0 }
   0x8   :  { %3230 = shalt.err (!%p3227_p2)
}
   0x9   :  { %s3231_s30 = scalar_lea.vmem %s35_s22, 16384  ;;  %p3236_p4 = scmp.lt.s32.totalorder %s35_s22, %s35_s22 }
   0xa   :  { %p3232_p3 = scmp.ne.s32.totalorder %s35_s22, %s3231_s30  ;;  %p3237_p5 = scmp.lt.s32.totalorder %s3231_s30, %s3231_s30 }
   0xc   :  { %p3238_p6 = por %p3237_p5, %p3236_p4 }
   0xe   :  { %p3239_p7 = pnand %p3238_p6, %p3232_p3 }
  0x10   :  { %3242 = shalt.err (!%p3239_p7)
}
  0x11   :  { %s3304_s7 = smov 512   ;;  %s3305_s8 = smov 32  }
  0x12   :  { %40 = dma.hbm_to_vmem [thread:$0]  %s3579_s2, 16384, %s35_s22, [#allocation6], %s3304_s7, %s3304_s7, %s3305_s8  }
  0x13   :  { %s3306_s11 = smov [#allocation2]   ;;  %s3243_s15 = scalar_lea.hbm %s3578_s1, 8192 }
  0x14   :  { %s22_s12 = sshll.u32 %s3306_s11, 4  ;;  %p3244_p8 = scmp.ne.s32.totalorder %s3578_s1, %s3243_s15  ;;  %s23_s12 = int_to_ptr.vmem [resolvable:$true] %s22_s12 }
  0x15   :  { %p3247_p9 = scmp.lt.u32.totalorder %s3243_s15, %s3578_s1 }
  0x17   :  { %p3249_p10 = pnand %p3247_p9, %p3244_p8 }
  0x19   :  { %3252 = shalt.err (!%p3249_p10)
}
  0x1a   :  { %s3253_s20 = scalar_lea.vmem %s23_s12, 8192  ;;  %p3258_p12 = scmp.lt.s32.totalorder %s23_s12, %s23_s12 }
  0x1b   :  { %p3254_p11 = scmp.ne.s32.totalorder %s23_s12, %s3253_s20  ;;  %p3259_p13 = scmp.lt.s32.totalorder %s3253_s20, %s3253_s20 }
  0x1d   :  { %p3260_p0 = por %p3259_p13, %p3258_p12 }
  0x1f   :  { %p3261_p1 = pnand %p3260_p0, %p3254_p11 }
  0x21   :  { %3264 = shalt.err (!%p3261_p1)
}
  0x22   :  { %s3307_s2 = smov 128   ;;  %s3308_s21 = smov 8  }
  0x23   :  { %28 = dma.hbm_to_vmem [thread:$0]  %s3578_s1, 8192, %s23_s12, [#allocation3], %s3307_s2, %s3307_s2, %s3308_s21  }
  0x24   :  { %s3309_s24 = smov [#allocation7]   ;;  %s3265_s28 = scalar_lea.hbm %s3580_s3, 16384 }
  0x25   :  { %s46_s25 = sshll.u32 %s3309_s24, 4  ;;  %p3266_p2 = scmp.ne.s32.totalorder %s3580_s3, %s3265_s28  ;;  %s47_s25 = int_to_ptr.vmem [resolvable:$true] %s46_s25 }
  0x26   :  { %p3269_p3 = scmp.lt.u32.totalorder %s3265_s28, %s3580_s3 }
  0x28   :  { %p3271_p4 = pnand %p3269_p3, %p3266_p2 }
  0x2a   :  { %3274 = shalt.err (!%p3271_p4)
}
  0x2b   :  { %s3275_s11 = scalar_lea.vmem %s47_s25, 16384  ;;  %p3280_p6 = scmp.lt.s32.totalorder %s47_s25, %s47_s25 }
  0x2c   :  { %p3276_p5 = scmp.ne.s32.totalorder %s47_s25, %s3275_s11  ;;  %p3281_p7 = scmp.lt.s32.totalorder %s3275_s11, %s3275_s11 }
  0x2e   :  { %p3282_p8 = por %p3281_p7, %p3280_p6 }
  0x30   :  { %p3283_p9 = pnand %p3282_p8, %p3276_p5 }
  0x32   :  { %3286 = shalt.err (!%p3283_p9)
}
  0x33   :  { %52 = dma.hbm_to_vmem [thread:$0]  %s3580_s3, 16384, %s47_s25, [#allocation6], %s3304_s7, %s3304_s7, %s3305_s8  }
  0x34   :  { %3297 = dma.done.wait [#allocation3], 8192  }
  0x35   :  { %3298 = vsyncadd [#allocation3], 4294959104 }
  0x36   :  { %3299 = dma.done.wait [#allocation6], 32768  }
  0x37   :  { %3300 = vsyncadd [#allocation6], 4294934528  ;;  %v3109_v0 = vld [vmem:[#allocation2 + $0x4] ss:$8 sps:$4 sm:$0xff]   ;;  %v3111_v1 = vld [vmem:[#allocation2] ss:$8 sps:$4 sm:$0xff]   ;;  %v135_v9 = vlaneseq }
  0x38   :  { %494 = vmatprep.subr.bf16.mxu0 %v3109_v0  ;;  %v3112_v2 = vld [vmem:[#allocation2 + $0x14] ss:$8 sps:$4 sm:$0xff]   ;;  %v3114_v3 = vld [vmem:[#allocation2 + $0x10] ss:$8 sps:$4 sm:$0xff]   ;;  %v3115_v4 = vld [vmem:[#allocation2 + $0x24] ss:$8 sps:$4 sm:$0xff]  }
  0x39   :  { %495 = vmatpush1.bf16.msra.mxu0 %v3111_v1  ;;  %v3117_v5 = vld [vmem:[#allocation2 + $0x20] ss:$8 sps:$4 sm:$0xff]   ;;  %v3118_v6 = vld [vmem:[#allocation2 + $0x34] ss:$8 sps:$4 sm:$0xff]   ;;  %v3120_v7 = vld [vmem:[#allocation2 + $0x30] ss:$8 sps:$4 sm:$0xff]  }
  0x3a   :  { %496 = vmatprep.subr.bf16.mxu0 %v3112_v2  ;;  %v3121_v8 = vld [vmem:[#allocation2 + $0x44] ss:$8 sps:$4 sm:$0xff]   ;;  %v3310_v10 = vmov 1966171168   ;;  %v3123_v12 = vld [vmem:[#allocation2 + $0x40] ss:$8 sps:$4 sm:$0xff]  }
  0x3b   :  { %v155_v11 = vunpack.c.l.s4 %v3310_v10  ;;  %v3124_v13 = vld [vmem:[#allocation2 + $0x54] ss:$8 sps:$4 sm:$0xff]   ;;  %v3391_v14 = vshrl.u32 %v135_v9, 7  ;;  %v3126_v16 = vld [vmem:[#allocation2 + $0x50] ss:$8 sps:$4 sm:$0xff]   ;;  %vm587_vm0 = vcmask 1041408  }
  0x3c   :  { %v3127_v17 = vld [vmem:[#allocation2 + $0x64] ss:$8 sps:$4 sm:$0xff]   ;;  %v2764_v19 = vld.sshfl [vmem:[%s3577_s0] sm:$0x33 pattern:$0x75316420] }
  0x3d   :  { %497 = vmatpush1.bf16.msra.mxu0 %v3114_v3  ;;  %v156_v15 = vunpack.c.0.s8 %v155_v11  ;;  %v153_v20 = vcombine.high %v2764_v19, %v2764_v19  ;;  %v3129_v21 = vld [vmem:[#allocation2 + $0x60] ss:$8 sps:$4 sm:$0xff]   ;;  %v3130_v22 = vld [vmem:[#allocation2 + $0x74] ss:$8 sps:$4 sm:$0xff]   ;;  %v3132_v24 = vld [vmem:[#allocation2 + $0x70] ss:$8 sps:$4 sm:$0xff]  }
  0x3e   :  { %498 = vmatprep.subr.bf16.mxu0 %v3115_v4  ;;  %v3133_v25 = vld [vmem:[#allocation2 + $0x84] ss:$8 sps:$4 sm:$0xff]   ;;  %v3135_v26 = vld [vmem:[#allocation2 + $0x80] ss:$8 sps:$4 sm:$0xff]   ;;  %v3136_v27 = vld [vmem:[#allocation2 + $0x94] ss:$8 sps:$4 sm:$0xff]  }
  0x3f   :  { %v159_v18 = vsub.s32 %v156_v15, %v3391_v14  ;;  %v3138_v28 = vld [vmem:[#allocation2 + $0x90] ss:$8 sps:$4 sm:$0xff]   ;;  %v3139_v29 = vld [vmem:[#allocation2 + $0xa4] ss:$8 sps:$4 sm:$0xff]   ;;  %v3141_v30 = vld [vmem:[#allocation2 + $0xa0] ss:$8 sps:$4 sm:$0xff]  }
  0x40   :  { %v3142_v31 = vld [vmem:[#allocation2 + $0xb4] ss:$8 sps:$4 sm:$0xff]   ;;  %v3144_v32 = vld [vmem:[#allocation2 + $0xb0] ss:$8 sps:$4 sm:$0xff]   ;;  %v3145_v33 = vld [vmem:[#allocation2 + $0xc4] ss:$8 sps:$4 sm:$0xff]  }
  0x41   :  { %499 = vmatpush1.bf16.msra.mxu0 %v3117_v5  ;;  %v167_v23 = vrot.slane %v153_v20, %v159_v18  ;;  %v3147_v34 = vld [vmem:[#allocation2 + $0xc0] ss:$8 sps:$4 sm:$0xff]   ;;  %v3148_v35 = vld [vmem:[#allocation2 + $0xd4] ss:$8 sps:$4 sm:$0xff]   ;;  %v3150_v36 = vld [vmem:[#allocation2 + $0xd0] ss:$8 sps:$4 sm:$0xff]   ;;  %v3397_v42 = vrot.slane %v2764_v19, %v159_v18 }
  0x42   :  { %500 = vmatprep.subr.bf16.mxu0 %v3118_v6  ;;  %v3151_v37 = vld [vmem:[#allocation2 + $0xe4] ss:$8 sps:$4 sm:$0xff]   ;;  %v3153_v38 = vld [vmem:[#allocation2 + $0xe0] ss:$8 sps:$4 sm:$0xff]   ;;  %v3154_v39 = vld [vmem:[#allocation2 + $0xf4] ss:$8 sps:$4 sm:$0xff]  }
  0x43   :  { %526 = vmatprep.mubr.bf16.mxu0 %v167_v23  ;;  %v3156_v40 = vld [vmem:[#allocation2 + $0xf0] ss:$8 sps:$4 sm:$0xff]   ;;  %v3159_v41 = vld [vmem:[#allocation2 + $0x104] ss:$8 sps:$4 sm:$0xff]   ;;  %v169_v43 = vcombine.high %v167_v23, %v167_v23  ;;  %v3157_v44 = vld [vmem:[#allocation2 + $0x100] ss:$8 sps:$4 sm:$0xff]   ;;  %v168_v11 = vcombine.high %v3397_v42, %v3397_v42 }
  0x44   :  { %v3162_v45 = vld [vmem:[#allocation2 + $0x114] ss:$8 sps:$4 sm:$0xff]   ;;  %v3160_v46 = vld [vmem:[#allocation2 + $0x110] ss:$8 sps:$4 sm:$0xff]   ;;  %v3165_v47 = vld [vmem:[#allocation2 + $0x124] ss:$8 sps:$4 sm:$0xff]  }
  0x45   :  { %501 = vmatpush1.bf16.msra.mxu0 %v3120_v7  ;;  %v3163_v48 = vld [vmem:[#allocation2 + $0x120] ss:$8 sps:$4 sm:$0xff]   ;;  %v3168_v49 = vld [vmem:[#allocation2 + $0x134] ss:$8 sps:$4 sm:$0xff]   ;;  %v3166_v50 = vld [vmem:[#allocation2 + $0x130] ss:$8 sps:$4 sm:$0xff]  }
  0x46   :  { %502 = vmatprep.subr.bf16.mxu0 %v3121_v8  ;;  %v3171_v51 = vld [vmem:[#allocation2 + $0x144] ss:$8 sps:$4 sm:$0xff]   ;;  %v3169_v52 = vld [vmem:[#allocation2 + $0x140] ss:$8 sps:$4 sm:$0xff]   ;;  %v3174_v53 = vld [vmem:[#allocation2 + $0x154] ss:$8 sps:$4 sm:$0xff]  }
  0x47   :  { %v3172_v54 = vld [vmem:[#allocation2 + $0x150] ss:$8 sps:$4 sm:$0xff]   ;;  %v3177_v55 = vld [vmem:[#allocation2 + $0x164] ss:$8 sps:$4 sm:$0xff]   ;;  %v3175_v56 = vld [vmem:[#allocation2 + $0x160] ss:$8 sps:$4 sm:$0xff]  }
  0x48   :  { %v3180_v57 = vld [vmem:[#allocation2 + $0x174] ss:$8 sps:$4 sm:$0xff]   ;;  %v3178_v58 = vld [vmem:[#allocation2 + $0x170] ss:$8 sps:$4 sm:$0xff]   ;;  %v3183_v59 = vld [vmem:[#allocation2 + $0x184] ss:$8 sps:$4 sm:$0xff]  }
  0x49   :  { %503 = vmatpush1.bf16.msra.mxu0 %v3123_v12  ;;  %v3181_v60 = vld [vmem:[#allocation2 + $0x180] ss:$8 sps:$4 sm:$0xff]   ;;  %v3186_v61 = vld [vmem:[#allocation2 + $0x194] ss:$8 sps:$4 sm:$0xff]   ;;  %v3184_v62 = vld [vmem:[#allocation2 + $0x190] ss:$8 sps:$4 sm:$0xff]  }
  0x4a   :  { %504 = vmatprep.subr.bf16.mxu0 %v3124_v13  ;;  %v3189_v63 = vld [vmem:[#allocation2 + $0x1a4] ss:$8 sps:$4 sm:$0xff]   ;;  %v3187_v0 = vld [vmem:[#allocation2 + $0x1a0] ss:$8 sps:$4 sm:$0xff]   ;;  %v3192_v1 = vld [vmem:[#allocation2 + $0x1b4] ss:$8 sps:$4 sm:$0xff]  }
  0x4b   :  { %v3190_v2 = vld [vmem:[#allocation2 + $0x1b0] ss:$8 sps:$4 sm:$0xff]   ;;  %v3195_v3 = vld [vmem:[#allocation2 + $0x1c4] ss:$8 sps:$4 sm:$0xff]   ;;  %v3193_v4 = vld [vmem:[#allocation2 + $0x1c0] ss:$8 sps:$4 sm:$0xff]  }
  0x4c   :  { %v3198_v5 = vld [vmem:[#allocation2 + $0x1d4] ss:$8 sps:$4 sm:$0xff]   ;;  %v3196_v6 = vld [vmem:[#allocation2 + $0x1d0] ss:$8 sps:$4 sm:$0xff]   ;;  %v3201_v7 = vld [vmem:[#allocation2 + $0x1e4] ss:$8 sps:$4 sm:$0xff]  }
  0x4d   :  { %505 = vmatpush1.bf16.msra.mxu0 %v3126_v16  ;;  %v3199_v8 = vld [vmem:[#allocation2 + $0x1e0] ss:$8 sps:$4 sm:$0xff]   ;;  %v3204_v9 = vld [vmem:[#allocation2 + $0x1f4] ss:$8 sps:$4 sm:$0xff]   ;;  %v3202_v10 = vld [vmem:[#allocation2 + $0x1f0] ss:$8 sps:$4 sm:$0xff]  }
  0x4e   :  { %506 = vmatprep.subr.bf16.mxu0 %v3127_v17  ;;  %v3403_v12 = vsub.s32 0, %v3391_v14  ;;  %v64_v13 = vld [vmem:[%s3581_s4] sm:$0x3]  ;;  %v3409_v15 = vsub.s32 1, %v3391_v14  ;;  %vm1654_vm1 = vcmask 1040384   ;;  %vm1659_vm2 = vcmask 1042432  }
  0x4f   :  { %s3312_s2 = smov 1.0   ;;  %s3287_s1 = scalar_lea.hbm %s3583_s6, 16 }
  0x50   :  { %v138_v16 = vrot.slane %v64_v13, %v3403_v12  ;;  %v142_v17 = vrot.slane %v64_v13, %v3409_v15  ;;  %v681_v13 = vld [vmem:[#allocation5 + $0x160] sm:$0xff]  ;;  %2736 = sst [smem:[#allocation8 + $0x3]] %s3312_s2  ;;  %p3288_p10 = scmp.ne.s32.totalorder %s3583_s6, %s3287_s1 }
  0x51   :  { %507 = vmatpush1.bf16.msra.mxu0 %v3129_v21  ;;  %2738 = sst [smem:[#allocation8 + $0x4]] %s3312_s2  ;;  %p3291_p11 = scmp.lt.u32.totalorder %s3287_s1, %s3583_s6 }
  0x52   :  { %508 = vmatprep.subr.bf16.mxu0 %v3130_v22 }
  0x53   :  { %p3293_p12 = pnand %p3291_p11, %p3288_p10 }
  0x55   :  { %509 = vmatpush1.bf16.msra.mxu0 %v3132_v24 }
  0x56   :  { %510 = vmatprep.subr.bf16.mxu0 %v3133_v25 }
  0x59   :  { %511 = vmatpush1.bf16.msra.mxu0 %v3135_v26 }
  0x5a   :  { %512 = vmatprep.subr.bf16.mxu0 %v3136_v27 }
  0x5d   :  { %513 = vmatpush1.bf16.msra.mxu0 %v3138_v28 }
  0x5e   :  { %514 = vmatprep.subr.bf16.mxu0 %v3139_v29 }
  0x61   :  { %515 = vmatpush1.bf16.msra.mxu0 %v3141_v30 }
  0x62   :  { %516 = vmatprep.subr.bf16.mxu0 %v3142_v31 }
  0x65   :  { %517 = vmatpush1.bf16.msra.mxu0 %v3144_v32 }
  0x66   :  { %518 = vmatprep.subr.bf16.mxu0 %v3145_v33 }
  0x69   :  { %519 = vmatpush1.bf16.msra.mxu0 %v3147_v34 }
  0x6a   :  { %520 = vmatprep.subr.bf16.mxu0 %v3148_v35 }
  0x6d   :  { %521 = vmatpush1.bf16.msra.mxu0 %v3150_v36 }
  0x6e   :  { %522 = vmatprep.subr.bf16.mxu0 %v3151_v37  ;;  %v637_v37 = vld [vmem:[#allocation5] sm:$0xff] }
  0x71   :  { %523 = vmatpush1.bf16.msra.mxu0 %v3153_v38  ;;  %v641_v38 = vld [vmem:[#allocation5 + $0x20] sm:$0xff] }
  0x72   :  { %524 = vmatprep.subr.bf16.mxu0 %v3154_v39  ;;  %v639_v39 = vld [vmem:[#allocation5 + $0x10] sm:$0xff] }
  0x75   :  { %525 = vmatpush1.bf16.msra.mxu0 %v3156_v40  ;;  %v2830_v40 = vcombine.high %v637_v37, %v641_v38 }
  0x76   :  { %535 = vmatprep.subr.bf16.mxu0 %v3159_v41  ;;  %v2829_v41 = vcombine.low %v637_v37, %v641_v38 }
  0x77   :  { %1446 = vmatprep.subr.bf16.mxu1 %v2830_v40  ;;  %v701_v40 = vld [vmem:[#allocation5 + $0x200] sm:$0xff] }
  0x78   :  { %527 = vmatmul.mubr.bf16.vlgmr.msra.gmra.mrb[0].mxu0 %v3397_v42  ;;  %v643_v42 = vld [vmem:[#allocation5 + $0x30] sm:$0xff]  ;;  %1447 = vmatpush1.bf16.msra.mxu1 %v2829_v41  ;;  %v705_v41 = vld [vmem:[#allocation5 + $0x220] sm:$0xff] }
  0x79   :  { %536 = vmatpush1.bf16.msra.mxu0 %v3157_v44  ;;  %567 = vmatprep.mubr.bf16.mxu0 %v169_v43  ;;  %v645_v43 = vld [vmem:[#allocation5 + $0x40] sm:$0xff] }
  0x7a   :  { %537 = vmatprep.subr.bf16.mxu0 %v3162_v45  ;;  %v649_v44 = vld [vmem:[#allocation5 + $0x60] sm:$0xff]  ;;  %v2833_v45 = vcombine.low %v639_v39, %v643_v42 }
  0x7d   :  { %538 = vmatpush1.bf16.msra.mxu0 %v3160_v46  ;;  %v2834_v46 = vcombine.high %v639_v39, %v643_v42  ;;  %v703_v42 = vld [vmem:[#allocation5 + $0x210] sm:$0xff] }
  0x7e   :  { %539 = vmatprep.subr.bf16.mxu0 %v3165_v47  ;;  %v2838_v47 = vcombine.high %v645_v43, %v649_v44 }
  0x80   :  { %1448 = vmatprep.subr.bf16.mxu1 %v2838_v47 }
  0x81   :  { %540 = vmatpush1.bf16.msra.mxu0 %v3163_v48  ;;  %v647_v48 = vld [vmem:[#allocation5 + $0x50] sm:$0xff] }
  0x82   :  { %541 = vmatprep.subr.bf16.mxu0 %v3168_v49  ;;  %v651_v49 = vld [vmem:[#allocation5 + $0x70] sm:$0xff] }
  0x85   :  { %542 = vmatpush1.bf16.msra.mxu0 %v3166_v50  ;;  %v653_v50 = vld [vmem:[#allocation5 + $0x80] sm:$0xff] }
  0x86   :  { %543 = vmatprep.subr.bf16.mxu0 %v3171_v51  ;;  %v2842_v51 = vcombine.high %v647_v48, %v651_v49 }
  0x89   :  { %544 = vmatpush1.bf16.msra.mxu0 %v3169_v52  ;;  %v657_v52 = vld [vmem:[#allocation5 + $0xa0] sm:$0xff] }
  0x8a   :  { %545 = vmatprep.subr.bf16.mxu0 %v3174_v53  ;;  %v655_v53 = vld [vmem:[#allocation5 + $0x90] sm:$0xff] }
  0x8d   :  { %546 = vmatpush1.bf16.msra.mxu0 %v3172_v54  ;;  %v659_v54 = vld [vmem:[#allocation5 + $0xb0] sm:$0xff] }
  0x8e   :  { %547 = vmatprep.subr.bf16.mxu0 %v3177_v55  ;;  %v2837_v55 = vcombine.low %v645_v43, %v649_v44  ;;  %v707_v43 = vld [vmem:[#allocation5 + $0x230] sm:$0xff] }
  0x8f   :  { %v2898_v47 = vcombine.high %v703_v42, %v707_v43 }
  0x90   :  { %1449 = vmatpush1.bf16.msra.mxu1 %v2837_v55 }
  0x91   :  { %548 = vmatpush1.bf16.msra.mxu0 %v3175_v56  ;;  %v2841_v56 = vcombine.low %v647_v48, %v651_v49  ;;  %v709_v48 = vld [vmem:[#allocation5 + $0x240] sm:$0xff] }
  0x92   :  { %549 = vmatprep.subr.bf16.mxu0 %v3180_v57  ;;  %v2846_v57 = vcombine.high %v653_v50, %v657_v52  ;;  %v713_v49 = vld [vmem:[#allocation5 + $0x260] sm:$0xff] }
  0x94   :  { %1450 = vmatprep.subr.bf16.mxu1 %v2846_v57  ;;  %v721_v57 = vld [vmem:[#allocation5 + $0x2a0] sm:$0xff] }
  0x95   :  { %550 = vmatpush1.bf16.msra.mxu0 %v3178_v58  ;;  %v2850_v58 = vcombine.high %v655_v53, %v659_v54 }
  0x96   :  { %551 = vmatprep.subr.bf16.mxu0 %v3183_v59  ;;  %v661_v59 = vld [vmem:[#allocation5 + $0xc0] sm:$0xff] }
  0x99   :  { %552 = vmatpush1.bf16.msra.mxu0 %v3181_v60  ;;  %v665_v60 = vld [vmem:[#allocation5 + $0xe0] sm:$0xff] }
  0x9a   :  { %553 = vmatprep.subr.bf16.mxu0 %v3186_v61  ;;  %v663_v61 = vld [vmem:[#allocation5 + $0xd0] sm:$0xff] }
  0x9d   :  { %554 = vmatpush1.bf16.msra.mxu0 %v3184_v62  ;;  %v667_v62 = vld [vmem:[#allocation5 + $0xf0] sm:$0xff] }
  0x9e   :  { %555 = vmatprep.subr.bf16.mxu0 %v3189_v63  ;;  %v2845_v63 = vcombine.low %v653_v50, %v657_v52  ;;  %v711_v50 = vld [vmem:[#allocation5 + $0x250] sm:$0xff]  ;;  %v2893_v52 = vcombine.low %v701_v40, %v705_v41 }
  0xa0   :  { %1451 = vmatpush1.bf16.msra.mxu1 %v2845_v63 }
  0xa1   :  { %556 = vmatpush1.bf16.msra.mxu0 %v3187_v0  ;;  %v2849_v0 = vcombine.low %v655_v53, %v659_v54  ;;  %v2897_v53 = vcombine.low %v703_v42, %v707_v43  ;;  %v2902_v54 = vcombine.high %v709_v48, %v713_v49  ;;  %v755_v42 = vld [vmem:[#allocation5 + $0x3b0] sm:$0xff] }
  0xa2   :  { %557 = vmatprep.subr.bf16.mxu0 %v3192_v1  ;;  %v2854_v1 = vcombine.high %v661_v59, %v665_v60 }
  0xa4   :  { %1452 = vmatprep.subr.bf16.mxu1 %v2854_v1 }
  0xa5   :  { %558 = vmatpush1.bf16.msra.mxu0 %v3190_v2  ;;  %v2858_v2 = vcombine.high %v663_v61, %v667_v62 }
  0xa6   :  { %559 = vmatprep.subr.bf16.mxu0 %v3195_v3  ;;  %v669_v3 = vld [vmem:[#allocation5 + $0x100] sm:$0xff] }
  0xa9   :  { %560 = vmatpush1.bf16.msra.mxu0 %v3193_v4  ;;  %v673_v4 = vld [vmem:[#allocation5 + $0x120] sm:$0xff] }
  0xaa   :  { %561 = vmatprep.subr.bf16.mxu0 %v3198_v5  ;;  %v671_v5 = vld [vmem:[#allocation5 + $0x110] sm:$0xff] }
  0xad   :  { %562 = vmatpush1.bf16.msra.mxu0 %v3196_v6  ;;  %v675_v6 = vld [vmem:[#allocation5 + $0x130] sm:$0xff] }
  0xae   :  { %563 = vmatprep.subr.bf16.mxu0 %v3201_v7  ;;  %v2853_v7 = vcombine.low %v661_v59, %v665_v60 }
  0xb0   :  { %1453 = vmatpush1.bf16.msra.mxu1 %v2853_v7  ;;  %v723_v7 = vld [vmem:[#allocation5 + $0x2b0] sm:$0xff] }
  0xb1   :  { %564 = vmatpush1.bf16.msra.mxu0 %v3199_v8  ;;  %v2857_v8 = vcombine.low %v663_v61, %v667_v62 }
  0xb2   :  { %565 = vmatprep.subr.bf16.mxu0 %v3204_v9  ;;  %v2862_v9 = vcombine.high %v669_v3, %v673_v4 }
  0xb4   :  { %1454 = vmatprep.subr.bf16.mxu1 %v2862_v9 }
  0xb5   :  { %566 = vmatpush1.bf16.msra.mxu0 %v3202_v10  ;;  %v2866_v10 = vcombine.high %v671_v5, %v675_v6 }
  0xb6   :  { %1528 = vmatprep.subr.bf16.mxu0 %v2834_v46  ;;  %v2894_v46 = vcombine.high %v701_v40, %v705_v41  ;;  %v751_v41 = vld [vmem:[#allocation5 + $0x390] sm:$0xff] }
  0xb8   :  { %568 = vmatmul.mubr.bf16.vlgmr.msra.gmra.mrb[0].mxu0 %v168_v11  ;;  %v677_v11 = vld [vmem:[#allocation5 + $0x140] sm:$0xff] }
  0xb9   :  { %1529 = vmatpush1.bf16.msra.mxu0 %v2833_v45 }
  0xba   :  { %1530 = vmatprep.subr.bf16.mxu0 %v2842_v51  ;;  %v715_v51 = vld [vmem:[#allocation5 + $0x270] sm:$0xff] }
  0xbb   :  { %v2906_v55 = vcombine.high %v711_v50, %v715_v51  ;;  %v2905_v59 = vcombine.low %v711_v50, %v715_v51  ;;  %v759_v50 = vld [vmem:[#allocation5 + $0x3d0] sm:$0xff] }
  0xbc   :  { %v763_v51 = vld [vmem:[#allocation5 + $0x3f0] sm:$0xff] }
  0xbd   :  { %1531 = vmatpush1.bf16.msra.mxu0 %v2841_v56  ;;  %v717_v56 = vld [vmem:[#allocation5 + $0x280] sm:$0xff] }
  0xbe   :  { %1532 = vmatprep.subr.bf16.mxu0 %v2850_v58  ;;  %v2901_v58 = vcombine.low %v709_v48, %v713_v49  ;;  %v2910_v60 = vcombine.high %v717_v56, %v721_v57 }
  0xc1   :  { %1533 = vmatpush1.bf16.msra.mxu0 %v2849_v0 }
  0xc2   :  { %1534 = vmatprep.subr.bf16.mxu0 %v2858_v2 }
  0xc5   :  { %1535 = vmatpush1.bf16.msra.mxu0 %v2857_v8  ;;  %v2909_v8 = vcombine.low %v717_v56, %v721_v57 }
  0xc6   :  { %1536 = vmatprep.subr.bf16.mxu0 %v2866_v10  ;;  %v729_v10 = vld [vmem:[#allocation5 + $0x2e0] sm:$0xff] }
 0x18b   :  { %v569_v18 = vpop.f32.mrb[0].mxu0 }
 0x18c   :  { %v3086_v19 = vadd.f32 %v569_v18, %v138_v16  ;;  %v571_v20 = vpop.f32.mrb[1].mxu0  ;;  %v679_v16 = vld [vmem:[#allocation5 + $0x150] sm:$0xff]  ;;  %v2861_v18 = vcombine.low %v669_v3, %v673_v4 }
 0x18d   :  { %v3087_v21 = vadd.f32 %v571_v20, %v142_v17  ;;  %v573_v22 = vpop.f32.mrb[2].mxu0  ;;  %v683_v17 = vld [vmem:[#allocation5 + $0x170] sm:$0xff]  ;;  %v2870_v20 = vcombine.high %v677_v11, %v681_v13 }
 0x18e   :  { %v579_v23 = vmul.f32 0.70710677, %v3086_v19  ;;  %v574_v24 = vpop.f32.mrb[3].mxu0  ;;  %v576_v28 = vmul.f32 0.5, %v3086_v19  ;;  %v2865_v19 = vcombine.low %v671_v5, %v675_v6  ;;  %v685_v22 = vld [vmem:[#allocation5 + $0x180] sm:$0xff]  ;;  %1455 = vmatpush1.bf16.msra.mxu1 %v2861_v18  ;;  %v719_v6 = vld [vmem:[#allocation5 + $0x290] sm:$0xff] }
 0x18f   :  { %v580_v25 = vmul.f32 0.70710677, %v3087_v21  ;;  %v577_v30 = vmul.f32 0.5, %v3087_v21  ;;  %v2874_v21 = vcombine.high %v679_v16, %v683_v17  ;;  %v687_v24 = vld [vmem:[#allocation5 + $0x190] sm:$0xff]  ;;  %1456 = vmatprep.subr.bf16.mxu1 %v2870_v20  ;;  %v2913_v9 = vcombine.low %v719_v6, %v723_v7  ;;  %v733_v20 = vld [vmem:[#allocation5 + $0x300] sm:$0xff] }
 0x190   :  { %3205 = verf.f32 %v579_v23  ;;  %v689_v23 = vld [vmem:[#allocation5 + $0x1a0] sm:$0xff]  ;;  %1537 = vmatpush1.bf16.msra.mxu0 %v2865_v19 }
 0x191   :  { %3207 = verf.f32 %v580_v25  ;;  %v691_v25 = vld [vmem:[#allocation5 + $0x1b0] sm:$0xff]  ;;  %1538 = vmatprep.subr.bf16.mxu0 %v2874_v21  ;;  %v737_v21 = vld [vmem:[#allocation5 + $0x320] sm:$0xff] }
 0x192   :  { %v2881_v37 = vcombine.low %v687_v24, %v691_v25 }
 0x19a   :  { %v3206_v26 = vpop.eup %3205 }
 0x19b   :  { %v3208_v27 = vpop.eup %3207  ;;  %v583_v29 = vadd.f32 1.0, %v3206_v26  ;;  %v2869_v26 = vcombine.low %v677_v11, %v681_v13  ;;  %v727_v13 = vld [vmem:[#allocation5 + $0x2d0] sm:$0xff] }
 0x19c   :  { %v584_v31 = vadd.f32 1.0, %v3208_v27  ;;  %v2873_v27 = vcombine.low %v679_v16, %v683_v17  ;;  %v731_v16 = vld [vmem:[#allocation5 + $0x2f0] sm:$0xff] }
 0x19d   :  { %v3413_v32 = vmul.f32 %v583_v29, %v576_v28  ;;  %v2878_v28 = vcombine.high %v685_v22, %v689_v23  ;;  %v2882_v29 = vcombine.high %v687_v24, %v691_v25  ;;  %1457 = vmatpush1.bf16.msra.mxu1 %v2869_v26  ;;  %v2922_v18 = vcombine.high %v727_v13, %v731_v16  ;;  %v739_v24 = vld [vmem:[#allocation5 + $0x330] sm:$0xff] }
 0x19e   :  { %v3415_v33 = vmul.f32 %v584_v31, %v577_v30  ;;  %v693_v30 = vld [vmem:[#allocation5 + $0x1c0] sm:$0xff]  ;;  %1539 = vmatpush1.bf16.msra.mxu0 %v2873_v27  ;;  %v2921_v19 = vcombine.low %v727_v13, %v731_v16  ;;  %v2925_v25 = vcombine.low %v733_v20, %v737_v21  ;;  %v654_v16 = vld [vmem:[#allocation5 + $0x88] sm:$0xff] }
 0x19f   :  { %v588_v34 = vsel %vm587_vm0, %v3413_v32, 0.0  ;;  %v697_v31 = vld [vmem:[#allocation5 + $0x1e0] sm:$0xff]  ;;  %1458 = vmatprep.subr.bf16.mxu1 %v2878_v28  ;;  %1540 = vmatprep.subr.bf16.mxu0 %v2882_v29 }
 0x1a0   :  { %v589_v35 = vsel %vm587_vm0, %v3415_v33, 0.0  ;;  %v2886_v38 = vcombine.high %v693_v30, %v697_v31  ;;  %v2885_v44 = vcombine.low %v693_v30, %v697_v31  ;;  %v741_v28 = vld [vmem:[#allocation5 + $0x340] sm:$0xff]  ;;  %v743_v31 = vld [vmem:[#allocation5 + $0x350] sm:$0xff] }
 0x1a1   :  { %v590_v36 = vadd.f32 %v589_v35, %v588_v34  ;;  %v695_v34 = vld [vmem:[#allocation5 + $0x1d0] sm:$0xff]  ;;  %v745_v29 = vld [vmem:[#allocation5 + $0x360] sm:$0xff] }
 0x1a2   :  { %v699_v35 = vld [vmem:[#allocation5 + $0x1f0] sm:$0xff]  ;;  %1541 = vmatpush1.bf16.msra.mxu0 %v2881_v37  ;;  %v2934_v30 = vcombine.high %v741_v28, %v745_v29 }
 0x1a3   :  { %591 = vadd.xlane.f32.xlu0 %v590_v36  ;;  %v2877_v36 = vcombine.low %v685_v22, %v689_v23  ;;  %v2890_v39 = vcombine.high %v695_v34, %v699_v35  ;;  %v2889_v45 = vcombine.low %v695_v34, %v699_v35  ;;  %v2926_v22 = vcombine.high %v733_v20, %v737_v21  ;;  %v735_v23 = vld [vmem:[#allocation5 + $0x310] sm:$0xff]  ;;  %v662_v20 = vld [vmem:[#allocation5 + $0xc8] sm:$0xff] }
 0x1a4   :  { %v2930_v26 = vcombine.high %v735_v23, %v739_v24  ;;  %v2929_v27 = vcombine.low %v735_v23, %v739_v24  ;;  %v747_v34 = vld [vmem:[#allocation5 + $0x370] sm:$0xff]  ;;  %v2933_v35 = vcombine.low %v741_v28, %v745_v29  ;;  %v666_v21 = vld [vmem:[#allocation5 + $0xe8] sm:$0xff] }
 0x1a5   :  { %1459 = vmatpush1.bf16.msra.mxu1 %v2877_v36  ;;  %1542 = vmatprep.subr.bf16.mxu0 %v2890_v39  ;;  %v2938_v36 = vcombine.high %v743_v31, %v747_v34  ;;  %v2937_v37 = vcombine.low %v743_v31, %v747_v34  ;;  %v753_v39 = vld [vmem:[#allocation5 + $0x3a0] sm:$0xff]  ;;  %v2856_v23 = vcombine.high %v662_v20, %v666_v21  ;;  %v670_v24 = vld [vmem:[#allocation5 + $0x108] sm:$0xff] }
 0x1a6   :  { %1460 = vmatprep.subr.bf16.mxu1 %v2886_v38  ;;  %1543 = vmatpush1.bf16.msra.mxu0 %v2889_v45  ;;  %v749_v38 = vld [vmem:[#allocation5 + $0x380] sm:$0xff]  ;;  %v2945_v45 = vcombine.low %v751_v41, %v755_v42  ;;  %v678_v28 = vld [vmem:[#allocation5 + $0x148] sm:$0xff] }
 0x1a7   :  { %1544 = vmatprep.subr.bf16.mxu0 %v2898_v47  ;;  %v2942_v40 = vcombine.high %v749_v38, %v753_v39  ;;  %v2941_v43 = vcombine.low %v749_v38, %v753_v39  ;;  %v761_v47 = vld [vmem:[#allocation5 + $0x3e0] sm:$0xff]  ;;  %v682_v29 = vld [vmem:[#allocation5 + $0x168] sm:$0xff] }
 0x1a8   :  { %v2872_v31 = vcombine.high %v678_v28, %v682_v29  ;;  %v686_v34 = vld [vmem:[#allocation5 + $0x188] sm:$0xff] }
 0x1a9   :  { %1461 = vmatpush1.bf16.msra.mxu1 %v2885_v44  ;;  %v2946_v44 = vcombine.high %v751_v41, %v755_v42  ;;  %v694_v38 = vld [vmem:[#allocation5 + $0x1c8] sm:$0xff] }
 0x1aa   :  { %1462 = vmatprep.subr.bf16.mxu1 %v2894_v46  ;;  %1545 = vmatpush1.bf16.msra.mxu0 %v2897_v53  ;;  %v757_v46 = vld [vmem:[#allocation5 + $0x3c0] sm:$0xff]  ;;  %v2954_v53 = vcombine.high %v759_v50, %v763_v51  ;;  %v698_v39 = vld [vmem:[#allocation5 + $0x1e8] sm:$0xff] }
 0x1ab   :  { %1546 = vmatprep.subr.bf16.mxu0 %v2906_v55  ;;  %v2950_v48 = vcombine.high %v757_v46, %v761_v47  ;;  %v2949_v49 = vcombine.low %v757_v46, %v761_v47  ;;  %v642_v55 = vld [vmem:[#allocation5 + $0x28] sm:$0xff]  ;;  %v2888_v41 = vcombine.high %v694_v38, %v698_v39 }
 0x1ac   :  { %v702_v42 = vld [vmem:[#allocation5 + $0x208] sm:$0xff] }
 0x1ad   :  { %1463 = vmatpush1.bf16.msra.mxu1 %v2893_v52  ;;  %v2953_v52 = vcombine.low %v759_v50, %v763_v51  ;;  %v710_v46 = vld [vmem:[#allocation5 + $0x248] sm:$0xff] }
 0x1ae   :  { %1464 = vmatprep.subr.bf16.mxu1 %v2902_v54  ;;  %1547 = vmatpush1.bf16.msra.mxu0 %v2905_v59  ;;  %v638_v54 = vld [vmem:[#allocation5 + $0x8] sm:$0xff] }
 0x1af   :  { %v2832_v56 = vcombine.high %v638_v54, %v642_v55  ;;  %v2831_v57 = vcombine.low %v638_v54, %v642_v55  ;;  %v714_v47 = vld [vmem:[#allocation5 + $0x268] sm:$0xff] }
 0x1b0   :  { %v718_v50 = vld [vmem:[#allocation5 + $0x288] sm:$0xff] }
 0x1b1   :  { %1465 = vmatpush1.bf16.msra.mxu1 %v2901_v58  ;;  %v722_v51 = vld [vmem:[#allocation5 + $0x2a8] sm:$0xff] }
 0x1b2   :  { %1466 = vmatprep.subr.bf16.mxu1 %v2910_v60  ;;  %v726_v54 = vld [vmem:[#allocation5 + $0x2c8] sm:$0xff] }
 0x1b3   :  { %v730_v55 = vld [vmem:[#allocation5 + $0x2e8] sm:$0xff] }
 0x1b5   :  { %1467 = vmatpush1.bf16.msra.mxu1 %v2909_v8 }
 0x230   :  { %v592_v61 = vpop.xlane.xlu0 %591 }
 0x231   :  { %v594_v62 = vmul.f32 0.00390625, %v592_v61  ;;  %v65_v61 = vld [vmem:[%s3581_s4 + $0x2] sm:$0x3] }
 0x233   :  { %v3422_v63 = vsub.f32 %v3413_v32, %v594_v62  ;;  %v3425_v0 = vsub.f32 %v3415_v33, %v594_v62  ;;  %v2914_v32 = vcombine.high %v719_v6, %v723_v7  ;;  %v725_v33 = vld [vmem:[#allocation5 + $0x2c0] sm:$0xff] }
 0x234   :  { %v2918_v11 = vcombine.high %v725_v33, %v729_v10  ;;  %v2917_v17 = vcombine.low %v725_v33, %v729_v10  ;;  %v66_v62 = vld [vmem:[%s3581_s4 + $0x4] sm:$0x3]  ;;  %v646_v10 = vld [vmem:[#allocation5 + $0x48] sm:$0xff] }
 0x235   :  { %v597_v1 = vmul.f32 %v3422_v63, %v3422_v63  ;;  %v598_v2 = vmul.f32 %v3425_v0, %v3425_v0  ;;  %1548 = vmatprep.subr.bf16.mxu0 %v2914_v32  ;;  %v630_v6 = vrot.slane %v66_v62, %v3409_v15  ;;  %v626_v7 = vrot.slane %v66_v62, %v3403_v12  ;;  %v742_v62 = vld [vmem:[#allocation5 + $0x348] sm:$0xff] }
 0x236   :  { %1549 = vmatpush1.bf16.msra.mxu0 %v2913_v9  ;;  %1468 = vmatprep.subr.bf16.mxu1 %v2918_v11  ;;  %v650_v11 = vld [vmem:[#allocation5 + $0x68] sm:$0xff] }
 0x237   :  { %v599_v3 = vsel %vm587_vm0, %v597_v1, 0.0  ;;  %v600_v4 = vsel %vm587_vm0, %v598_v2, 0.0  ;;  %1469 = vmatpush1.bf16.msra.mxu1 %v2917_v17  ;;  %1550 = vmatprep.subr.bf16.mxu0 %v2922_v18  ;;  %v613_v1 = vrot.slane %v65_v61, %v3403_v12  ;;  %v617_v2 = vrot.slane %v65_v61, %v3409_v15  ;;  %v658_v17 = vld [vmem:[#allocation5 + $0xa8] sm:$0xff] }
 0x238   :  { %v601_v5 = vadd.f32 %v600_v4, %v599_v3  ;;  %1470 = vmatprep.subr.bf16.mxu1 %v2926_v22  ;;  %v2839_v18 = vcombine.low %v646_v10, %v650_v11  ;;  %v2847_v22 = vcombine.low %v654_v16, %v658_v17 }
 0x23a   :  { %602 = vadd.xlane.f32.xlu0 %v601_v5  ;;  %1551 = vmatpush1.bf16.msra.mxu0 %v2921_v19  ;;  %v2848_v19 = vcombine.high %v654_v16, %v658_v17  ;;  %v644_v16 = vld [vmem:[#allocation5 + $0x38] sm:$0xff] }
 0x23b   :  { %1471 = vmatpush1.bf16.msra.mxu1 %v2925_v25  ;;  %1552 = vmatprep.subr.bf16.mxu0 %v2930_v26  ;;  %v674_v25 = vld [vmem:[#allocation5 + $0x128] sm:$0xff]  ;;  %v2855_v26 = vcombine.low %v662_v20, %v666_v21  ;;  %v652_v20 = vld [vmem:[#allocation5 + $0x78] sm:$0xff] }
 0x23c   :  { %1472 = vmatprep.subr.bf16.mxu1 %v2934_v30  ;;  %v2863_v30 = vcombine.low %v670_v24, %v674_v25 }
 0x23e   :  { %1553 = vmatpush1.bf16.msra.mxu0 %v2929_v27  ;;  %v2864_v27 = vcombine.high %v670_v24, %v674_v25  ;;  %v660_v24 = vld [vmem:[#allocation5 + $0xb8] sm:$0xff] }
 0x23f   :  { %1473 = vmatpush1.bf16.msra.mxu1 %v2933_v35  ;;  %1554 = vmatprep.subr.bf16.mxu0 %v2938_v36  ;;  %v690_v35 = vld [vmem:[#allocation5 + $0x1a8] sm:$0xff]  ;;  %v2871_v36 = vcombine.low %v678_v28, %v682_v29  ;;  %v668_v28 = vld [vmem:[#allocation5 + $0xf8] sm:$0xff] }
 0x240   :  { %1474 = vmatprep.subr.bf16.mxu1 %v2942_v40  ;;  %v2879_v40 = vcombine.low %v686_v34, %v690_v35 }
 0x242   :  { %1555 = vmatpush1.bf16.msra.mxu0 %v2937_v37  ;;  %v2880_v37 = vcombine.high %v686_v34, %v690_v35  ;;  %v676_v34 = vld [vmem:[#allocation5 + $0x138] sm:$0xff] }
 0x243   :  { %1475 = vmatpush1.bf16.msra.mxu1 %v2941_v43  ;;  %1556 = vmatprep.subr.bf16.mxu0 %v2946_v44  ;;  %v706_v43 = vld [vmem:[#allocation5 + $0x228] sm:$0xff]  ;;  %v2887_v44 = vcombine.low %v694_v38, %v698_v39  ;;  %v684_v38 = vld [vmem:[#allocation5 + $0x178] sm:$0xff] }
 0x244   :  { %1476 = vmatprep.subr.bf16.mxu1 %v2950_v48  ;;  %v2895_v48 = vcombine.low %v702_v42, %v706_v43 }
 0x246   :  { %1557 = vmatpush1.bf16.msra.mxu0 %v2945_v45  ;;  %v2896_v45 = vcombine.high %v702_v42, %v706_v43 }
 0x247   :  { %1477 = vmatpush1.bf16.msra.mxu1 %v2949_v49  ;;  %1558 = vmatprep.subr.bf16.mxu0 %v2954_v53  ;;  %v2904_v49 = vcombine.high %v710_v46, %v714_v47  ;;  %v2912_v53 = vcombine.high %v718_v50, %v722_v51 }
 0x248   :  { %1487 = vmatprep.subr.bf16.mxu1 %v2832_v56  ;;  %v2911_v56 = vcombine.low %v718_v50, %v722_v51 }
 0x24a   :  { %1559 = vmatpush1.bf16.msra.mxu0 %v2953_v52  ;;  %v2903_v52 = vcombine.low %v710_v46, %v714_v47 }
 0x2c7   :  { %v603_v58 = vpop.xlane.xlu0 %602 }
 0x2c8   :  { %v604_v59 = vmul.f32 0.00390625, %v603_v58  ;;  %v734_v58 = vld [vmem:[#allocation5 + $0x308] sm:$0xff] }
 0x2ca   :  { %v605_v60 = vadd.f32 1e-05, %v604_v59  ;;  %v738_v59 = vld [vmem:[#allocation5 + $0x328] sm:$0xff] }
 0x2cb   :  { %v2928_v61 = vcombine.high %v734_v58, %v738_v59 }
 0x2cc   :  { %3209 = vrsqrt.f32 %v605_v60  ;;  %v2919_v60 = vcombine.low %v726_v54, %v730_v55 }
 0x2d6   :  { %v3210_v3 = vpop.eup %3209 }
 0x2d7   :  { %v607_v4 = vmul.f32 %v3210_v3, %v3422_v63  ;;  %v608_v5 = vmul.f32 %v3210_v3, %v3425_v0  ;;  %v2840_v0 = vcombine.high %v646_v10, %v650_v11 }
 0x2d9   :  { %v620_v8 = vmul.f32 %v613_v1, %v607_v4  ;;  %v621_v32 = vmul.f32 %v617_v2, %v608_v5  ;;  %v746_v1 = vld [vmem:[#allocation5 + $0x368] sm:$0xff]  ;;  %v2927_v2 = vcombine.low %v734_v58, %v738_v59 }
 0x2da   :  { %v2936_v3 = vcombine.high %v742_v62, %v746_v1  ;;  %v750_v4 = vld [vmem:[#allocation5 + $0x388] sm:$0xff] }
 0x2db   :  { %v3445_v9 = vadd.f32 %v630_v6, %v621_v32  ;;  %v3447_v33 = vadd.f32 %v626_v7, %v620_v8  ;;  %v754_v5 = vld [vmem:[#allocation5 + $0x3a8] sm:$0xff]  ;;  %v2935_v6 = vcombine.low %v742_v62, %v746_v1 }
 0x2dc   :  { %v2944_v7 = vcombine.high %v750_v4, %v754_v5  ;;  %v758_v8 = vld [vmem:[#allocation5 + $0x3c8] sm:$0xff]  ;;  %v2943_v10 = vcombine.low %v750_v4, %v754_v5 }
 0x2dd   :  { %v3451_v13 = vpack.c.bf16 %v3445_v9, %v3445_v9  ;;  %v3455_v63 = vpack.c.bf16 %v3447_v33, %v3447_v33  ;;  %v762_v32 = vld [vmem:[#allocation5 + $0x3e8] sm:$0xff] }
 0x2de   :  { %v2952_v11 = vcombine.high %v758_v8, %v762_v32  ;;  %v2951_v17 = vcombine.low %v758_v8, %v762_v32 }
 0x2df   :  { %1478 = vmatprep.mubr.bf16.mxu1 %v3451_v13  ;;  %1560 = vmatprep.mubr.bf16.mxu0 %v3451_v13 }
 0x2e0   :  { %1479 = vmatmul.mubr.bf16.vlgmr.msra.gmra.mrb[0].mxu1 %v3455_v63  ;;  %1561 = vmatmul.mubr.bf16.vlgmr.msra.gmra.mrb[4].mxu0 %v3455_v63 }
 0x2e1   :  { %1488 = vmatpush1.bf16.msra.mxu1 %v2831_v57  ;;  %1519 = vmatprep.mubr.bf16.mxu1 %v3451_v13  ;;  %v2920_v57 = vcombine.high %v726_v54, %v730_v55 }
 0x2e2   :  { %1489 = vmatprep.subr.bf16.mxu1 %v2840_v0  ;;  %v640_v0 = vld [vmem:[#allocation5 + $0x18] sm:$0xff] }
 0x2e3   :  { %v2835_v21 = vcombine.low %v640_v0, %v644_v16 }
 0x2e5   :  { %1490 = vmatpush1.bf16.msra.mxu1 %v2839_v18  ;;  %v2836_v18 = vcombine.high %v640_v0, %v644_v16 }
 0x2e6   :  { %1491 = vmatprep.subr.bf16.mxu1 %v2848_v19  ;;  %v648_v19 = vld [vmem:[#allocation5 + $0x58] sm:$0xff] }
 0x2e7   :  { %v2843_v25 = vcombine.low %v648_v19, %v652_v20 }
 0x2e9   :  { %1492 = vmatpush1.bf16.msra.mxu1 %v2847_v22  ;;  %v2844_v22 = vcombine.high %v648_v19, %v652_v20 }
 0x2ea   :  { %1493 = vmatprep.subr.bf16.mxu1 %v2856_v23  ;;  %v656_v23 = vld [vmem:[#allocation5 + $0x98] sm:$0xff] }
 0x2eb   :  { %v2851_v29 = vcombine.low %v656_v23, %v660_v24 }
 0x2ed   :  { %1494 = vmatpush1.bf16.msra.mxu1 %v2855_v26  ;;  %v2852_v26 = vcombine.high %v656_v23, %v660_v24  ;;  %v1668_v23 = vld [vmem:[#allocation7 + $0x20] sm:$0xff]  ;;  %v1665_v24 = vld [vmem:[#allocation7 + $0x8] sm:$0xff] }
 0x2ee   :  { %1495 = vmatprep.subr.bf16.mxu1 %v2864_v27  ;;  %v664_v27 = vld [vmem:[#allocation5 + $0xd8] sm:$0xff] }
 0x2ef   :  { %v2859_v35 = vcombine.low %v664_v27, %v668_v28 }
 0x2f1   :  { %1496 = vmatpush1.bf16.msra.mxu1 %v2863_v30  ;;  %v2860_v30 = vcombine.high %v664_v27, %v668_v28 }
 0x2f2   :  { %1497 = vmatprep.subr.bf16.mxu1 %v2872_v31  ;;  %v672_v31 = vld [vmem:[#allocation5 + $0x118] sm:$0xff] }
 0x2f3   :  { %v2867_v39 = vcombine.low %v672_v31, %v676_v34 }
 0x2f5   :  { %1498 = vmatpush1.bf16.msra.mxu1 %v2871_v36  ;;  %v2868_v36 = vcombine.high %v672_v31, %v676_v34  ;;  %v1676_v31 = vld [vmem:[#allocation7 + $0x60] sm:$0xff]  ;;  %v1673_v34 = vld [vmem:[#allocation7 + $0x48] sm:$0xff] }
 0x2f6   :  { %1499 = vmatprep.subr.bf16.mxu1 %v2880_v37  ;;  %v680_v37 = vld [vmem:[#allocation5 + $0x158] sm:$0xff] }
 0x2f7   :  { %v2875_v42 = vcombine.low %v680_v37, %v684_v38 }
 0x2f9   :  { %1500 = vmatpush1.bf16.msra.mxu1 %v2879_v40  ;;  %v688_v40 = vld [vmem:[#allocation5 + $0x198] sm:$0xff] }
 0x2fa   :  { %1501 = vmatprep.subr.bf16.mxu1 %v2888_v41  ;;  %v692_v41 = vld [vmem:[#allocation5 + $0x1b8] sm:$0xff] }
 0x2fb   :  { %v2884_v43 = vcombine.high %v688_v40, %v692_v41  ;;  %v2883_v46 = vcombine.low %v688_v40, %v692_v41  ;;  %v1681_v40 = vld [vmem:[#allocation7 + $0x88] sm:$0xff] }
 0x2fd   :  { %1502 = vmatpush1.bf16.msra.mxu1 %v2887_v44  ;;  %v696_v44 = vld [vmem:[#allocation5 + $0x1d8] sm:$0xff] }
 0x2fe   :  { %1503 = vmatprep.subr.bf16.mxu1 %v2896_v45  ;;  %v700_v45 = vld [vmem:[#allocation5 + $0x1f8] sm:$0xff] }
 0x2ff   :  { %v2892_v47 = vcombine.high %v696_v44, %v700_v45  ;;  %v2891_v50 = vcombine.low %v696_v44, %v700_v45 }
 0x301   :  { %1504 = vmatpush1.bf16.msra.mxu1 %v2895_v48  ;;  %v704_v48 = vld [vmem:[#allocation5 + $0x218] sm:$0xff] }
 0x302   :  { %1505 = vmatprep.subr.bf16.mxu1 %v2904_v49  ;;  %v708_v49 = vld [vmem:[#allocation5 + $0x238] sm:$0xff] }
 0x303   :  { %v2900_v51 = vcombine.high %v704_v48, %v708_v49  ;;  %v2899_v54 = vcombine.low %v704_v48, %v708_v49  ;;  %v1689_v48 = vld [vmem:[#allocation7 + $0xc8] sm:$0xff] }
 0x305   :  { %1506 = vmatpush1.bf16.msra.mxu1 %v2903_v52  ;;  %v712_v52 = vld [vmem:[#allocation5 + $0x258] sm:$0xff] }
 0x306   :  { %1507 = vmatprep.subr.bf16.mxu1 %v2912_v53  ;;  %v716_v53 = vld [vmem:[#allocation5 + $0x278] sm:$0xff] }
 0x307   :  { %v2908_v55 = vcombine.high %v712_v52, %v716_v53  ;;  %v2907_v58 = vcombine.low %v712_v52, %v716_v53 }
 0x309   :  { %1508 = vmatpush1.bf16.msra.mxu1 %v2911_v56  ;;  %v720_v56 = vld [vmem:[#allocation5 + $0x298] sm:$0xff] }
 0x30a   :  { %1509 = vmatprep.subr.bf16.mxu1 %v2920_v57  ;;  %v724_v57 = vld [vmem:[#allocation5 + $0x2b8] sm:$0xff] }
 0x30b   :  { %v2916_v59 = vcombine.high %v720_v56, %v724_v57  ;;  %v2915_v62 = vcombine.low %v720_v56, %v724_v57  ;;  %v1697_v56 = vld [vmem:[#allocation7 + $0x108] sm:$0xff] }
 0x30d   :  { %1510 = vmatpush1.bf16.msra.mxu1 %v2919_v60  ;;  %v728_v60 = vld [vmem:[#allocation5 + $0x2d8] sm:$0xff] }
 0x30e   :  { %1511 = vmatprep.subr.bf16.mxu1 %v2928_v61  ;;  %v732_v61 = vld [vmem:[#allocation5 + $0x2f8] sm:$0xff] }
 0x30f   :  { %v2924_v1 = vcombine.high %v728_v60, %v732_v61  ;;  %v2923_v4 = vcombine.low %v728_v60, %v732_v61  ;;  %v1704_v60 = vld [vmem:[#allocation7 + $0x140] sm:$0xff] }
 0x310   :  { %v1708_v61 = vld [vmem:[#allocation7 + $0x160] sm:$0xff] }
 0x311   :  { %1512 = vmatpush1.bf16.msra.mxu1 %v2927_v2  ;;  %v736_v2 = vld [vmem:[#allocation5 + $0x318] sm:$0xff] }
 0x312   :  { %1513 = vmatprep.subr.bf16.mxu1 %v2936_v3  ;;  %v740_v3 = vld [vmem:[#allocation5 + $0x338] sm:$0xff] }
 0x313   :  { %v2932_v5 = vcombine.high %v736_v2, %v740_v3  ;;  %v2931_v8 = vcombine.low %v736_v2, %v740_v3  ;;  %v2998_v2 = vcombine.high %v1704_v60, %v1708_v61  ;;  %v1705_v3 = vld [vmem:[#allocation7 + $0x148] sm:$0xff] }
 0x315   :  { %1514 = vmatpush1.bf16.msra.mxu1 %v2935_v6  ;;  %v744_v6 = vld [vmem:[#allocation5 + $0x358] sm:$0xff] }
 0x316   :  { %1515 = vmatprep.subr.bf16.mxu1 %v2944_v7  ;;  %v748_v7 = vld [vmem:[#allocation5 + $0x378] sm:$0xff] }
 0x317   :  { %v2940_v32 = vcombine.high %v744_v6, %v748_v7  ;;  %v2939_v0 = vcombine.low %v744_v6, %v748_v7  ;;  %v1716_v7 = vld [vmem:[#allocation7 + $0x1a0] sm:$0xff] }
 0x319   :  { %1516 = vmatpush1.bf16.msra.mxu1 %v2943_v10  ;;  %v752_v10 = vld [vmem:[#allocation5 + $0x398] sm:$0xff] }
 0x31a   :  { %1517 = vmatprep.subr.bf16.mxu1 %v2952_v11  ;;  %v756_v11 = vld [vmem:[#allocation5 + $0x3b8] sm:$0xff] }
 0x31b   :  { %v2948_v16 = vcombine.high %v752_v10, %v756_v11  ;;  %v2947_v19 = vcombine.low %v752_v10, %v756_v11  ;;  %v2997_v10 = vcombine.low %v1704_v60, %v1708_v61  ;;  %v1765_v60 = vld [vmem:[#allocation7 + $0x328] sm:$0xff] }
 0x31d   :  { %1518 = vmatpush1.bf16.msra.mxu1 %v2951_v17  ;;  %v760_v17 = vld [vmem:[#allocation5 + $0x3d8] sm:$0xff] }
 0x31e   :  { %1569 = vmatprep.subr.bf16.mxu1 %v2836_v18  ;;  %v764_v18 = vld [vmem:[#allocation5 + $0x3f8] sm:$0xff] }
 0x31f   :  { %v2956_v20 = vcombine.high %v760_v17, %v764_v18 }
 0x320   :  { %1520 = vmatmul.mubr.bf16.vlgmr.msra.gmra.mrb[4].mxu1 %v3455_v63 }
 0x321   :  { %1570 = vmatpush1.bf16.msra.mxu1 %v2835_v21  ;;  %1601 = vmatprep.mubr.bf16.mxu1 %v3451_v13  ;;  %v2876_v13 = vcombine.high %v680_v37, %v684_v38  ;;  %v2955_v21 = vcombine.low %v760_v17, %v764_v18  ;;  %v1720_v17 = vld [vmem:[#allocation7 + $0x1c0] sm:$0xff] }
 0x322   :  { %1571 = vmatprep.subr.bf16.mxu1 %v2844_v22  ;;  %v1664_v22 = vld [vmem:[#allocation7] sm:$0xff] }
 0x323   :  { %v2957_v27 = vcombine.low %v1664_v22, %v1668_v23  ;;  %v1724_v18 = vld [vmem:[#allocation7 + $0x1e0] sm:$0xff] }
 0x325   :  { %1572 = vmatpush1.bf16.msra.mxu1 %v2843_v25  ;;  %v2958_v25 = vcombine.high %v1664_v22, %v1668_v23  ;;  %v3014_v23 = vcombine.high %v1720_v17, %v1724_v18 }
 0x326   :  { %1573 = vmatprep.subr.bf16.mxu1 %v2852_v26  ;;  %v1669_v26 = vld [vmem:[#allocation7 + $0x28] sm:$0xff] }
 0x327   :  { %v2959_v28 = vcombine.low %v1665_v24, %v1669_v26  ;;  %2473 = vmatprep.subr.bf16.mxu0 %v2958_v25  ;;  %v1728_v25 = vld [vmem:[#allocation7 + $0x200] sm:$0xff] }
 0x328   :  { %2474 = vmatpush1.bf16.msra.mxu0 %v2957_v27  ;;  %v1729_v27 = vld [vmem:[#allocation7 + $0x208] sm:$0xff] }
 0x329   :  { %1574 = vmatpush1.bf16.msra.mxu1 %v2851_v29  ;;  %v2960_v29 = vcombine.high %v1665_v24, %v1669_v26  ;;  %v1732_v26 = vld [vmem:[#allocation7 + $0x220] sm:$0xff] }
 0x32a   :  { %1575 = vmatprep.subr.bf16.mxu1 %v2860_v30  ;;  %v1672_v30 = vld [vmem:[#allocation7 + $0x40] sm:$0xff] }
 0x32b   :  { %v2965_v37 = vcombine.low %v1672_v30, %v1676_v31 }
 0x32d   :  { %1576 = vmatpush1.bf16.msra.mxu1 %v2859_v35  ;;  %v2966_v35 = vcombine.high %v1672_v30, %v1676_v31  ;;  %v3022_v31 = vcombine.high %v1728_v25, %v1732_v26 }
 0x32e   :  { %1577 = vmatprep.subr.bf16.mxu1 %v2868_v36  ;;  %v1677_v36 = vld [vmem:[#allocation7 + $0x68] sm:$0xff] }
 0x32f   :  { %v2967_v38 = vcombine.low %v1673_v34, %v1677_v36  ;;  %2475 = vmatprep.subr.bf16.mxu0 %v2966_v35  ;;  %v1736_v35 = vld [vmem:[#allocation7 + $0x240] sm:$0xff] }
 0x330   :  { %2476 = vmatpush1.bf16.msra.mxu0 %v2965_v37  ;;  %v1737_v37 = vld [vmem:[#allocation7 + $0x248] sm:$0xff] }
 0x331   :  { %1578 = vmatpush1.bf16.msra.mxu1 %v2867_v39  ;;  %v1680_v39 = vld [vmem:[#allocation7 + $0x80] sm:$0xff] }
 0x332   :  { %1579 = vmatprep.subr.bf16.mxu1 %v2876_v13  ;;  %v1684_v13 = vld [vmem:[#allocation7 + $0xa0] sm:$0xff] }
 0x333   :  { %v2974_v41 = vcombine.high %v1680_v39, %v1684_v13 }
 0x335   :  { %1580 = vmatpush1.bf16.msra.mxu1 %v2875_v42  ;;  %v1685_v42 = vld [vmem:[#allocation7 + $0xa8] sm:$0xff]  ;;  %2477 = vmatprep.subr.bf16.mxu0 %v2974_v41  ;;  %v1744_v41 = vld [vmem:[#allocation7 + $0x280] sm:$0xff] }
 0x336   :  { %1581 = vmatprep.subr.bf16.mxu1 %v2884_v43  ;;  %v2973_v43 = vcombine.low %v1680_v39, %v1684_v13  ;;  %v2975_v44 = vcombine.low %v1681_v40, %v1685_v42  ;;  %v2976_v45 = vcombine.high %v1681_v40, %v1685_v42  ;;  %v1748_v42 = vld [vmem:[#allocation7 + $0x2a0] sm:$0xff] }
 0x338   :  { %2478 = vmatpush1.bf16.msra.mxu0 %v2973_v43  ;;  %v1745_v43 = vld [vmem:[#allocation7 + $0x288] sm:$0xff] }
 0x339   :  { %1582 = vmatpush1.bf16.msra.mxu1 %v2883_v46  ;;  %v1688_v46 = vld [vmem:[#allocation7 + $0xc0] sm:$0xff] }
 0x33a   :  { %1583 = vmatprep.subr.bf16.mxu1 %v2892_v47  ;;  %v1692_v47 = vld [vmem:[#allocation7 + $0xe0] sm:$0xff] }
 0x33b   :  { %v2982_v49 = vcombine.high %v1688_v46, %v1692_v47 }
 0x33d   :  { %1584 = vmatpush1.bf16.msra.mxu1 %v2891_v50  ;;  %v1693_v50 = vld [vmem:[#allocation7 + $0xe8] sm:$0xff]  ;;  %2479 = vmatprep.subr.bf16.mxu0 %v2982_v49  ;;  %v1752_v49 = vld [vmem:[#allocation7 + $0x2c0] sm:$0xff] }
 0x33e   :  { %1585 = vmatprep.subr.bf16.mxu1 %v2900_v51  ;;  %v2981_v51 = vcombine.low %v1688_v46, %v1692_v47  ;;  %v2983_v52 = vcombine.low %v1689_v48, %v1693_v50  ;;  %v2984_v53 = vcombine.high %v1689_v48, %v1693_v50  ;;  %v3038_v47 = vcombine.high %v1744_v41, %v1748_v42  ;;  %v1756_v50 = vld [vmem:[#allocation7 + $0x2e0] sm:$0xff] }
 0x33f   :  { %v3045_v61 = vcombine.low %v1752_v49, %v1756_v50 }
 0x340   :  { %2480 = vmatpush1.bf16.msra.mxu0 %v2981_v51  ;;  %v1753_v51 = vld [vmem:[#allocation7 + $0x2c8] sm:$0xff] }
 0x341   :  { %1586 = vmatpush1.bf16.msra.mxu1 %v2899_v54  ;;  %v1696_v54 = vld [vmem:[#allocation7 + $0x100] sm:$0xff] }
 0x342   :  { %1587 = vmatprep.subr.bf16.mxu1 %v2908_v55  ;;  %v1700_v55 = vld [vmem:[#allocation7 + $0x120] sm:$0xff] }
 0x343   :  { %v2989_v57 = vcombine.low %v1696_v54, %v1700_v55 }
 0x345   :  { %1588 = vmatpush1.bf16.msra.mxu1 %v2907_v58  ;;  %v2990_v58 = vcombine.high %v1696_v54, %v1700_v55  ;;  %v3046_v55 = vcombine.high %v1752_v49, %v1756_v50 }
 0x346   :  { %1589 = vmatprep.subr.bf16.mxu1 %v2916_v59  ;;  %v1701_v59 = vld [vmem:[#allocation7 + $0x128] sm:$0xff] }
 0x347   :  { %2481 = vmatprep.subr.bf16.mxu0 %v2990_v58  ;;  %v1764_v58 = vld [vmem:[#allocation7 + $0x320] sm:$0xff] }
 0x348   :  { %2482 = vmatpush1.bf16.msra.mxu0 %v2989_v57  ;;  %v1760_v57 = vld [vmem:[#allocation7 + $0x300] sm:$0xff] }
 0x349   :  { %1590 = vmatpush1.bf16.msra.mxu1 %v2915_v62  ;;  %v2991_v62 = vcombine.low %v1697_v56, %v1701_v59  ;;  %2483 = vmatprep.subr.bf16.mxu0 %v2998_v2 }
 0x34a   :  { %1591 = vmatprep.subr.bf16.mxu1 %v2924_v1  ;;  %v2992_v1 = vcombine.high %v1697_v56, %v1701_v59  ;;  %v1761_v59 = vld [vmem:[#allocation7 + $0x308] sm:$0xff] }
 0x34b   :  { %v3056_v2 = vcombine.high %v1761_v59, %v1765_v60 }
 0x34c   :  { %2484 = vmatpush1.bf16.msra.mxu0 %v2997_v10 }
 0x34d   :  { %1592 = vmatpush1.bf16.msra.mxu1 %v2923_v4  ;;  %v1709_v4 = vld [vmem:[#allocation7 + $0x168] sm:$0xff] }
 0x34e   :  { %1593 = vmatprep.subr.bf16.mxu1 %v2932_v5  ;;  %v1712_v5 = vld [vmem:[#allocation7 + $0x180] sm:$0xff]  ;;  %v3000_v6 = vcombine.high %v1705_v3, %v1709_v4  ;;  %v2999_v11 = vcombine.low %v1705_v3, %v1709_v4 }
 0x34f   :  { %v1768_v3 = vld [vmem:[#allocation7 + $0x340] sm:$0xff] }
 0x350   :  { %v1772_v4 = vld [vmem:[#allocation7 + $0x360] sm:$0xff] }
 0x351   :  { %1594 = vmatpush1.bf16.msra.mxu1 %v2931_v8  ;;  %v1713_v8 = vld [vmem:[#allocation7 + $0x188] sm:$0xff] }
 0x352   :  { %1595 = vmatprep.subr.bf16.mxu1 %v2940_v32  ;;  %v1717_v32 = vld [vmem:[#allocation7 + $0x1a8] sm:$0xff] }
 0x353   :  { %v3007_v22 = vcombine.low %v1713_v8, %v1717_v32 }
 0x355   :  { %1596 = vmatpush1.bf16.msra.mxu1 %v2939_v0  ;;  %v3006_v0 = vcombine.high %v1712_v5, %v1716_v7 }
 0x356   :  { %1597 = vmatprep.subr.bf16.mxu1 %v2948_v16  ;;  %v3008_v16 = vcombine.high %v1713_v8, %v1717_v32  ;;  %v3055_v8 = vcombine.low %v1761_v59, %v1765_v60  ;;  %v3062_v32 = vcombine.high %v1768_v3, %v1772_v4 }
 0x357   :  { %2485 = vmatprep.subr.bf16.mxu0 %v3006_v0 }
 0x359   :  { %1598 = vmatpush1.bf16.msra.mxu1 %v2947_v19  ;;  %v1721_v19 = vld [vmem:[#allocation7 + $0x1c8] sm:$0xff] }
 0x35a   :  { %1599 = vmatprep.subr.bf16.mxu1 %v2956_v20  ;;  %v1725_v20 = vld [vmem:[#allocation7 + $0x1e8] sm:$0xff] }
 0x35b   :  { %v3016_v24 = vcombine.high %v1721_v19, %v1725_v20  ;;  %v3015_v30 = vcombine.low %v1721_v19, %v1725_v20  ;;  %v1781_v20 = vld [vmem:[#allocation7 + $0x3a8] sm:$0xff] }
 0x35d   :  { %1600 = vmatpush1.bf16.msra.mxu1 %v2955_v21  ;;  %v3005_v21 = vcombine.low %v1712_v5, %v1716_v7  ;;  %v1769_v5 = vld [vmem:[#allocation7 + $0x348] sm:$0xff]  ;;  %v3053_v7 = vcombine.low %v1760_v57, %v1764_v58 }
 0x35e   :  { %2514 = vmatprep.subr.bf16.mxu1 %v2960_v29  ;;  %v3013_v29 = vcombine.low %v1720_v17, %v1724_v18  ;;  %v1780_v17 = vld [vmem:[#allocation7 + $0x3a0] sm:$0xff]  ;;  %v1777_v18 = vld [vmem:[#allocation7 + $0x388] sm:$0xff] }
 0x35f   :  { %2486 = vmatpush1.bf16.msra.mxu0 %v3005_v21 }
 0x360   :  { %1602 = vmatmul.mubr.bf16.vlgmr.msra.gmra.mrb[8].mxu1 %v3455_v63  ;;  %v2968_v63 = vcombine.high %v1673_v34, %v1677_v36  ;;  %2487 = vmatprep.subr.bf16.mxu0 %v3014_v23  ;;  %v1740_v36 = vld [vmem:[#allocation7 + $0x260] sm:$0xff] }
 0x361   :  { %2515 = vmatpush1.bf16.msra.mxu1 %v2959_v28  ;;  %v1733_v28 = vld [vmem:[#allocation7 + $0x228] sm:$0xff]  ;;  %v3030_v13 = vcombine.high %v1736_v35, %v1740_v36 }
 0x362   :  { %2516 = vmatprep.subr.bf16.mxu1 %v2968_v63  ;;  %v3024_v34 = vcombine.high %v1729_v27, %v1733_v28  ;;  %v3021_v63 = vcombine.low %v1728_v25, %v1732_v26  ;;  %v3023_v39 = vcombine.low %v1729_v27, %v1733_v28  ;;  %v3072_v25 = vcombine.high %v1777_v18, %v1781_v20 }
 0x363   :  { %2488 = vmatpush1.bf16.msra.mxu0 %v3013_v29 }
 0x364   :  { %2489 = vmatprep.subr.bf16.mxu0 %v3022_v31  ;;  %v1788_v31 = vld [vmem:[#allocation7 + $0x3e0] sm:$0xff] }
 0x365   :  { %2517 = vmatpush1.bf16.msra.mxu1 %v2967_v38  ;;  %v1741_v38 = vld [vmem:[#allocation7 + $0x268] sm:$0xff] }
 0x366   :  { %2518 = vmatprep.subr.bf16.mxu1 %v2976_v45  ;;  %v3032_v40 = vcombine.high %v1737_v37, %v1741_v38  ;;  %v3029_v45 = vcombine.low %v1736_v35, %v1740_v36  ;;  %v3031_v46 = vcombine.low %v1737_v37, %v1741_v38  ;;  %v1789_v38 = vld [vmem:[#allocation7 + $0x3e8] sm:$0xff] }
 0x367   :  { %2490 = vmatpush1.bf16.msra.mxu0 %v3021_v63 }
 0x368   :  { %2491 = vmatprep.subr.bf16.mxu0 %v3030_v13 }
 0x369   :  { %2519 = vmatpush1.bf16.msra.mxu1 %v2975_v44  ;;  %v1749_v44 = vld [vmem:[#allocation7 + $0x2a8] sm:$0xff] }
 0x36a   :  { %2520 = vmatprep.subr.bf16.mxu1 %v2984_v53  ;;  %v3040_v48 = vcombine.high %v1745_v43, %v1749_v44  ;;  %v3037_v53 = vcombine.low %v1744_v41, %v1748_v42  ;;  %v3039_v54 = vcombine.low %v1745_v43, %v1749_v44  ;;  %v3471_v41 = vld [vmem:[#allocation7 + $0x30] sm:$0xff]  ;;  %v3473_v42 = vld [vmem:[#allocation7 + $0x18] sm:$0xff] }
 0x36b   :  { %2492 = vmatpush1.bf16.msra.mxu0 %v3029_v45  ;;  %v3477_v44 = vld [vmem:[#allocation7 + $0x38] sm:$0xff] }
 0x36c   :  { %2493 = vmatprep.subr.bf16.mxu0 %v3038_v47  ;;  %v2964_v47 = vcombine.high %v3473_v42, %v3477_v44 }
 0x36d   :  { %2521 = vmatpush1.bf16.msra.mxu1 %v2983_v52  ;;  %v1757_v52 = vld [vmem:[#allocation7 + $0x2e8] sm:$0xff] }
 0x36e   :  { %2522 = vmatprep.subr.bf16.mxu1 %v2992_v1  ;;  %v3048_v56 = vcombine.high %v1753_v51, %v1757_v52  ;;  %v3054_v1 = vcombine.high %v1760_v57, %v1764_v58 }
 0x36f   :  { %2494 = vmatpush1.bf16.msra.mxu0 %v3037_v53  ;;  %v776_v53 = vsub.s32 2, %v3391_v14 }
 0x370   :  { %2495 = vmatprep.subr.bf16.mxu0 %v3046_v55 }
 0x371   :  { %2523 = vmatpush1.bf16.msra.mxu1 %v2991_v62  ;;  %v3047_v62 = vcombine.low %v1753_v51, %v1757_v52 }
 0x372   :  { %2524 = vmatprep.subr.bf16.mxu1 %v3000_v6  ;;  %v1773_v6 = vld [vmem:[#allocation7 + $0x368] sm:$0xff] }
 0x373   :  { %2496 = vmatpush1.bf16.msra.mxu0 %v3045_v61  ;;  %v3064_v10 = vcombine.high %v1769_v5, %v1773_v6  ;;  %v3063_v0 = vcombine.low %v1769_v5, %v1773_v6  ;;  %v784_v6 = vsub.s32 4, %v3391_v14 }
 0x374   :  { %2497 = vmatprep.subr.bf16.mxu0 %v3054_v1 }
 0x375   :  { %2525 = vmatpush1.bf16.msra.mxu1 %v2999_v11  ;;  %v3061_v11 = vcombine.low %v1768_v3, %v1772_v4 }
 0x376   :  { %2526 = vmatprep.subr.bf16.mxu1 %v3008_v16  ;;  %v1776_v16 = vld [vmem:[#allocation7 + $0x380] sm:$0xff] }
 0x377   :  { %2498 = vmatpush1.bf16.msra.mxu0 %v3053_v7  ;;  %v3070_v19 = vcombine.high %v1776_v16, %v1780_v17  ;;  %v3069_v23 = vcombine.low %v1776_v16, %v1780_v17 }
 0x378   :  { %2499 = vmatprep.subr.bf16.mxu0 %v3062_v32 }
 0x379   :  { %2527 = vmatpush1.bf16.msra.mxu1 %v3007_v22 }
 0x37a   :  { %2528 = vmatprep.subr.bf16.mxu1 %v3016_v24  ;;  %v3071_v24 = vcombine.low %v1777_v18, %v1781_v20 }
 0x37b   :  { %2500 = vmatpush1.bf16.msra.mxu0 %v3061_v11 }
 0x37c   :  { %2501 = vmatprep.subr.bf16.mxu0 %v3070_v19 }
 0x37d   :  { %2529 = vmatpush1.bf16.msra.mxu1 %v3015_v30  ;;  %v1784_v30 = vld [vmem:[#allocation7 + $0x3c0] sm:$0xff] }
 0x37e   :  { %2530 = vmatprep.subr.bf16.mxu1 %v3024_v34  ;;  %v1785_v34 = vld [vmem:[#allocation7 + $0x3c8] sm:$0xff]  ;;  %v3078_v37 = vcombine.high %v1784_v30, %v1788_v31  ;;  %v3077_v63 = vcombine.low %v1784_v30, %v1788_v31 }
 0x37f   :  { %2502 = vmatpush1.bf16.msra.mxu0 %v3069_v23  ;;  %v3080_v13 = vcombine.high %v1785_v34, %v1789_v38 }
 0x380   :  { %2503 = vmatprep.subr.bf16.mxu0 %v3078_v37 }
 0x381   :  { %2531 = vmatpush1.bf16.msra.mxu1 %v3023_v39  ;;  %v3079_v39 = vcombine.low %v1785_v34, %v1789_v38 }
 0x382   :  { %2532 = vmatprep.subr.bf16.mxu1 %v3032_v40  ;;  %v3469_v40 = vld [vmem:[#allocation7 + $0x10] sm:$0xff] }
 0x383   :  { %2504 = vmatpush1.bf16.msra.mxu0 %v3077_v63  ;;  %v2962_v43 = vcombine.high %v3469_v40, %v3471_v41  ;;  %v2961_v45 = vcombine.low %v3469_v40, %v3471_v41 }
 0x385   :  { %2533 = vmatpush1.bf16.msra.mxu1 %v3031_v46  ;;  %v2963_v46 = vcombine.low %v3473_v42, %v3477_v44  ;;  %2555 = vmatprep.subr.bf16.mxu0 %v2962_v43 }
 0x386   :  { %2534 = vmatprep.subr.bf16.mxu1 %v3040_v48  ;;  %v67_v48 = vld [vmem:[%s3581_s4 + $0x6] sm:$0xff] }
 0x387   :  { %v769_v49 = vrot.slane %v67_v48, %v3403_v12  ;;  %v773_v50 = vrot.slane %v67_v48, %v3409_v15  ;;  %v777_v57 = vrot.slane %v67_v48, %v776_v53 }
 0x389   :  { %2535 = vmatpush1.bf16.msra.mxu1 %v3039_v54  ;;  %v780_v54 = vsub.s32 3, %v3391_v14 }
 0x38a   :  { %2536 = vmatprep.subr.bf16.mxu1 %v3048_v56 }
 0x38b   :  { %v781_v58 = vrot.slane %v67_v48, %v780_v54 }
 0x38d   :  { %2537 = vmatpush1.bf16.msra.mxu1 %v3047_v62 }
 0x38e   :  { %2538 = vmatprep.subr.bf16.mxu1 %v3056_v2 }
 0x391   :  { %2539 = vmatpush1.bf16.msra.mxu1 %v3055_v8  ;;  %v788_v8 = vsub.s32 5, %v3391_v14 }
 0x392   :  { %2540 = vmatprep.subr.bf16.mxu1 %v3064_v10  ;;  %v785_v10 = vrot.slane %v67_v48, %v784_v6 }
 0x393   :  { %v789_v16 = vrot.slane %v67_v48, %v788_v8 }
 0x395   :  { %2541 = vmatpush1.bf16.msra.mxu1 %v3063_v0 }
 0x396   :  { %2542 = vmatprep.subr.bf16.mxu1 %v3072_v25 }
 0x399   :  { %2543 = vmatpush1.bf16.msra.mxu1 %v3071_v24 }
 0x39a   :  { %2544 = vmatprep.subr.bf16.mxu1 %v3080_v13 }
 0x39d   :  { %2545 = vmatpush1.bf16.msra.mxu1 %v3079_v39 }
 0x39e   :  { %2596 = vmatprep.subr.bf16.mxu1 %v2964_v47  ;;  %v792_v47 = vsub.s32 6, %v3391_v14 }
 0x3b3   :  { %v1480_v21 = vpop.f32.mrb[0].mxu1  ;;  %v3465_v22 = vpop.f32.mrb[4].mxu0 }
 0x3b4   :  { %v1482_v26 = vpop.f32.mrb[1].mxu1  ;;  %v3467_v27 = vpop.f32.mrb[5].mxu0  ;;  %v1481_v51 = vadd.f32 %v1480_v21, %v769_v49  ;;  %v1563_v24 = vadd.f32 %v3465_v22, %v785_v10  ;;  %v793_v49 = vrot.slane %v67_v48, %v792_v47 }
 0x3b5   :  { %v1484_v28 = vpop.f32.mrb[2].mxu1  ;;  %v1566_v29 = vpop.f32.mrb[6].mxu0  ;;  %v1483_v52 = vadd.f32 %v1482_v26, %v773_v50 }
 0x3b6   :  { %v1485_v35 = vpop.f32.mrb[3].mxu1  ;;  %v1567_v36 = vpop.f32.mrb[7].mxu0  ;;  %v1612_v55 = vmul.f32 0.70710677, %v1481_v51  ;;  %v1610_v0 = vmul.f32 0.5, %v1481_v51  ;;  %v1565_v29 = vadd.f32 %v3467_v27, %v789_v16  ;;  %v796_v27 = vsub.s32 7, %v3391_v14 }
 0x3b7   :  { %v1613_v56 = vmul.f32 0.70710677, %v1483_v52  ;;  %v1611_v18 = vmul.f32 0.5, %v1483_v52  ;;  %v1644_v36 = vrot.slane %v1563_v24, 7  ;;  %v1687_v16 = vld [vmem:[#allocation7 + $0xb8] sm:$0xff] }
 0x3b8   :  { %3211 = verf.f32 %v1612_v55  ;;  %v1645_v63 = vrot.slane %v1565_v29, 7  ;;  %v797_v50 = vrot.slane %v67_v48, %v796_v27  ;;  %v1691_v24 = vld [vmem:[#allocation7 + $0xd8] sm:$0xff] }
 0x3b9   :  { %3213 = verf.f32 %v1613_v56 }
 0x3c2   :  { %v3212_v5 = vpop.eup %3211 }
 0x3c3   :  { %v3214_v7 = vpop.eup %3213  ;;  %v1616_v32 = vadd.f32 1.0, %v3212_v5 }
 0x3c4   :  { %v1617_v11 = vadd.f32 1.0, %v3214_v7 }
 0x3c5   :  { %v1618_v20 = vmul.f32 %v1616_v32, %v1610_v0  ;;  %v1682_v32 = vld [vmem:[#allocation7 + $0x90] sm:$0xff]  ;;  %v1683_v0 = vld [vmem:[#allocation7 + $0x98] sm:$0xff] }
 0x3c6   :  { %v1619_v25 = vmul.f32 %v1617_v11, %v1611_v18  ;;  %v1686_v11 = vld [vmem:[#allocation7 + $0xb0] sm:$0xff]  ;;  %v2979_v41 = vcombine.low %v1683_v0, %v1687_v16 }
 0x3c7   :  { %v1632_v34 = vrot.slane %v1618_v20, 1  ;;  %v2980_v20 = vcombine.high %v1683_v0, %v1687_v16  ;;  %v2977_v40 = vcombine.low %v1682_v32, %v1686_v11 }
 0x3c8   :  { %v1633_v37 = vrot.slane %v1619_v25, 1  ;;  %v1695_v25 = vld [vmem:[#allocation7 + $0xf8] sm:$0xff] }
 0x3c9   :  { %v2988_v44 = vcombine.high %v1691_v24, %v1695_v25 }
 0x3f3   :  { %v1521_v59 = vpop.f32.mrb[4].mxu1 }
 0x3f4   :  { %v1522_v60 = vadd.f32 %v1521_v59, %v777_v57  ;;  %v1523_v61 = vpop.f32.mrb[5].mxu1 }
 0x3f5   :  { %v1524_v62 = vadd.f32 %v1523_v61, %v781_v58  ;;  %v1525_v1 = vpop.f32.mrb[6].mxu1 }
 0x3f6   :  { %v1622_v2 = vmul.f32 0.70710677, %v1522_v60  ;;  %v1526_v3 = vpop.f32.mrb[7].mxu1  ;;  %v1620_v21 = vmul.f32 0.5, %v1522_v60 }
 0x3f7   :  { %v1623_v4 = vmul.f32 0.70710677, %v1524_v62  ;;  %v1621_v26 = vmul.f32 0.5, %v1524_v62  ;;  %v1674_v62 = vld [vmem:[#allocation7 + $0x50] sm:$0xff]  ;;  %v1675_v3 = vld [vmem:[#allocation7 + $0x58] sm:$0xff] }
 0x3f8   :  { %3215 = verf.f32 %v1622_v2  ;;  %v1678_v2 = vld [vmem:[#allocation7 + $0x70] sm:$0xff] }
 0x3f9   :  { %3217 = verf.f32 %v1623_v4  ;;  %v1679_v4 = vld [vmem:[#allocation7 + $0x78] sm:$0xff]  ;;  %v2970_v48 = vcombine.high %v1674_v62, %v1678_v2 }
 0x3fa   :  { %v2972_v10 = vcombine.high %v1675_v3, %v1679_v4  ;;  %v2971_v18 = vcombine.low %v1675_v3, %v1679_v4  ;;  %v1730_v4 = vld [vmem:[#allocation7 + $0x210] sm:$0xff] }
 0x402   :  { %v3216_v17 = vpop.eup %3215 }
 0x403   :  { %v3218_v19 = vpop.eup %3217  ;;  %v1626_v23 = vadd.f32 1.0, %v3216_v17  ;;  %v2969_v17 = vcombine.low %v1674_v62, %v1678_v2 }
 0x404   :  { %v1627_v28 = vadd.f32 1.0, %v3218_v19  ;;  %v2978_v19 = vcombine.high %v1682_v32, %v1686_v11  ;;  %v1731_v32 = vld [vmem:[#allocation7 + $0x218] sm:$0xff] }
 0x405   :  { %v1628_v30 = vmul.f32 %v1626_v23, %v1620_v21  ;;  %v1690_v21 = vld [vmem:[#allocation7 + $0xd0] sm:$0xff] }
 0x406   :  { %v1629_v31 = vmul.f32 %v1627_v28, %v1621_v26  ;;  %v1694_v23 = vld [vmem:[#allocation7 + $0xf0] sm:$0xff]  ;;  %v1699_v26 = vld [vmem:[#allocation7 + $0x118] sm:$0xff] }
 0x407   :  { %v1638_v35 = vrot.slane %v1628_v30, 7  ;;  %v2986_v42 = vcombine.high %v1690_v21, %v1694_v23  ;;  %v1703_v28 = vld [vmem:[#allocation7 + $0x138] sm:$0xff]  ;;  %v2985_v29 = vcombine.low %v1690_v21, %v1694_v23  ;;  %v2987_v30 = vcombine.low %v1691_v24, %v1695_v25 }
 0x408   :  { %v1639_v38 = vrot.slane %v1629_v31, 7 }
 0x409   :  { %v1655_v39 = vsel %vm1654_vm1, %v1632_v34, %v1638_v35  ;;  %v2996_v34 = vcombine.high %v1699_v26, %v1703_v28  ;;  %v1706_v35 = vld [vmem:[#allocation7 + $0x150] sm:$0xff] }
 0x40a   :  { %v1656_v13 = vsel %vm1654_vm1, %v1633_v37, %v1639_v38  ;;  %v1657_v22 = vsel %vm587_vm0, %v1655_v39, %v1644_v36  ;;  %v1710_v36 = vld [vmem:[#allocation7 + $0x170] sm:$0xff]  ;;  %v1707_v37 = vld [vmem:[#allocation7 + $0x158] sm:$0xff]  ;;  %v2995_v39 = vcombine.low %v1699_v26, %v1703_v28 }
 0x40b   :  { %v1658_v43 = vsel %vm587_vm0, %v1656_v13, %v1645_v63  ;;  %v1711_v38 = vld [vmem:[#allocation7 + $0x178] sm:$0xff]  ;;  %v3002_v13 = vcombine.high %v1706_v35, %v1710_v36 }
 0x433   :  { %v1603_v51 = vpop.f32.mrb[8].mxu1 }
 0x434   :  { %v1604_v52 = vadd.f32 %v1603_v51, %v793_v49  ;;  %v1605_v55 = vpop.f32.mrb[9].mxu1  ;;  %v1718_v49 = vld [vmem:[#allocation7 + $0x1b0] sm:$0xff]  ;;  %v1719_v51 = vld [vmem:[#allocation7 + $0x1b8] sm:$0xff] }
 0x435   :  { %v1606_v56 = vadd.f32 %v1605_v55, %v797_v50  ;;  %v1607_v57 = vpop.f32.mrb[10].mxu1  ;;  %v1715_v50 = vld [vmem:[#allocation7 + $0x198] sm:$0xff]  ;;  %v3003_v55 = vcombine.low %v1707_v37, %v1711_v38 }
 0x436   :  { %v1650_v58 = vrot.slane %v1604_v52, 5  ;;  %v1608_v59 = vpop.f32.mrb[11].mxu1  ;;  %v3001_v52 = vcombine.low %v1706_v35, %v1710_v36  ;;  %v3012_v57 = vcombine.high %v1715_v50, %v1719_v51 }
 0x437   :  { %v1651_v60 = vrot.slane %v1606_v56, 5  ;;  %v1726_v59 = vld [vmem:[#allocation7 + $0x1f0] sm:$0xff] }
 0x438   :  { %v1660_v61 = vsel %vm1659_vm2, %v1657_v22, %v1650_v58  ;;  %v3004_v22 = vcombine.high %v1707_v37, %v1711_v38  ;;  %v1722_v58 = vld [vmem:[#allocation7 + $0x1d0] sm:$0xff] }
 0x439   :  { %v1661_v1 = vsel %vm1659_vm2, %v1658_v43, %v1651_v60  ;;  %v3514_v7 = vpack.c.bf16 %v1660_v61, %v1660_v61  ;;  %v1714_v43 = vld [vmem:[#allocation7 + $0x190] sm:$0xff]  ;;  %v1723_v60 = vld [vmem:[#allocation7 + $0x1d8] sm:$0xff]  ;;  %v3018_v2 = vcombine.high %v1722_v58, %v1726_v59 }
 0x43a   :  { %v1663_v5 = vpack.c.bf16 %v1661_v1, %v1661_v1  ;;  %v3010_v56 = vcombine.high %v1714_v43, %v1718_v49  ;;  %v1727_v61 = vld [vmem:[#allocation7 + $0x1f8] sm:$0xff]  ;;  %v3009_v62 = vcombine.low %v1714_v43, %v1718_v49  ;;  %v3011_v1 = vcombine.low %v1715_v50, %v1719_v51 }
 0x43b   :  { %v3020_v3 = vcombine.high %v1723_v60, %v1727_v61  ;;  %v3019_v11 = vcombine.low %v1723_v60, %v1727_v61 }
 0x43c   :  { %2505 = vmatprep.mubr.bf16.mxu0 %v1663_v5  ;;  %2546 = vmatprep.mubr.bf16.mxu1 %v1663_v5 }
 0x43d   :  { %2506 = vmatmul.mubr.bf16.vlgmr.msra.gmra.mrb[8].mxu0 %v3514_v7  ;;  %2547 = vmatmul.mubr.bf16.vlgmr.msra.gmra.mrb[12].mxu1 %v3514_v7 }
 0x43e   :  { %2556 = vmatpush1.bf16.msra.mxu0 %v2961_v45  ;;  %2597 = vmatpush1.bf16.msra.mxu1 %v2963_v46  ;;  %v1698_v45 = vld [vmem:[#allocation7 + $0x110] sm:$0xff] }
 0x43f   :  { %2587 = vmatprep.mubr.bf16.mxu0 %v1663_v5  ;;  %2628 = vmatprep.mubr.bf16.mxu1 %v1663_v5  ;;  %v1702_v46 = vld [vmem:[#allocation7 + $0x130] sm:$0xff] }
 0x440   :  { %2557 = vmatprep.subr.bf16.mxu0 %v2970_v48  ;;  %2598 = vmatprep.subr.bf16.mxu1 %v2972_v10  ;;  %v2994_v31 = vcombine.high %v1698_v45, %v1702_v46  ;;  %v2993_v63 = vcombine.low %v1698_v45, %v1702_v46  ;;  %v1734_v5 = vld [vmem:[#allocation7 + $0x230] sm:$0xff]  ;;  %v1735_v48 = vld [vmem:[#allocation7 + $0x238] sm:$0xff]  ;;  %v3017_v10 = vcombine.low %v1722_v58, %v1726_v59 }
 0x441   :  { %v3026_v0 = vcombine.high %v1730_v4, %v1734_v5  ;;  %v3028_v16 = vcombine.high %v1731_v32, %v1735_v48  ;;  %v3025_v21 = vcombine.low %v1730_v4, %v1734_v5  ;;  %v3027_v23 = vcombine.low %v1731_v32, %v1735_v48 }
 0x442   :  { %2558 = vmatpush1.bf16.msra.mxu0 %v2969_v17  ;;  %2599 = vmatpush1.bf16.msra.mxu1 %v2971_v18  ;;  %v1738_v17 = vld [vmem:[#allocation7 + $0x250] sm:$0xff] }
 0x443   :  { %2559 = vmatprep.subr.bf16.mxu0 %v2978_v19  ;;  %2600 = vmatprep.subr.bf16.mxu1 %v2980_v20  ;;  %v1742_v18 = vld [vmem:[#allocation7 + $0x270] sm:$0xff]  ;;  %v1739_v19 = vld [vmem:[#allocation7 + $0x258] sm:$0xff] }
 0x444   :  { %v1743_v20 = vld [vmem:[#allocation7 + $0x278] sm:$0xff]  ;;  %v3034_v24 = vcombine.high %v1738_v17, %v1742_v18  ;;  %v3033_v45 = vcombine.low %v1738_v17, %v1742_v18 }
 0x445   :  { %v3036_v25 = vcombine.high %v1739_v19, %v1743_v20  ;;  %v3035_v46 = vcombine.low %v1739_v19, %v1743_v20 }
 0x446   :  { %2560 = vmatpush1.bf16.msra.mxu0 %v2977_v40  ;;  %2601 = vmatpush1.bf16.msra.mxu1 %v2979_v41  ;;  %v1746_v40 = vld [vmem:[#allocation7 + $0x290] sm:$0xff] }
 0x447   :  { %2561 = vmatprep.subr.bf16.mxu0 %v2986_v42  ;;  %2602 = vmatprep.subr.bf16.mxu1 %v2988_v44  ;;  %v1750_v41 = vld [vmem:[#allocation7 + $0x2b0] sm:$0xff]  ;;  %v1747_v42 = vld [vmem:[#allocation7 + $0x298] sm:$0xff] }
 0x448   :  { %v1751_v44 = vld [vmem:[#allocation7 + $0x2b8] sm:$0xff]  ;;  %v3042_v26 = vcombine.high %v1746_v40, %v1750_v41  ;;  %v3041_v35 = vcombine.low %v1746_v40, %v1750_v41 }
 0x449   :  { %v3044_v28 = vcombine.high %v1747_v42, %v1751_v44  ;;  %v3043_v36 = vcombine.low %v1747_v42, %v1751_v44 }
 0x44a   :  { %2562 = vmatpush1.bf16.msra.mxu0 %v2985_v29  ;;  %2603 = vmatpush1.bf16.msra.mxu1 %v2987_v30  ;;  %v1754_v29 = vld [vmem:[#allocation7 + $0x2d0] sm:$0xff] }
 0x44b   :  { %2563 = vmatprep.subr.bf16.mxu0 %v2994_v31  ;;  %2604 = vmatprep.subr.bf16.mxu1 %v2996_v34  ;;  %v1758_v30 = vld [vmem:[#allocation7 + $0x2f0] sm:$0xff]  ;;  %v1755_v31 = vld [vmem:[#allocation7 + $0x2d8] sm:$0xff] }
 0x44c   :  { %v1759_v34 = vld [vmem:[#allocation7 + $0x2f8] sm:$0xff]  ;;  %v3050_v37 = vcombine.high %v1754_v29, %v1758_v30  ;;  %v3049_v43 = vcombine.low %v1754_v29, %v1758_v30 }
 0x44d   :  { %v3052_v38 = vcombine.high %v1755_v31, %v1759_v34  ;;  %v3051_v49 = vcombine.low %v1755_v31, %v1759_v34 }
 0x44e   :  { %2564 = vmatpush1.bf16.msra.mxu0 %v2993_v63  ;;  %2605 = vmatpush1.bf16.msra.mxu1 %v2995_v39  ;;  %v1762_v63 = vld [vmem:[#allocation7 + $0x310] sm:$0xff] }
 0x44f   :  { %2565 = vmatprep.subr.bf16.mxu0 %v3002_v13  ;;  %2606 = vmatprep.subr.bf16.mxu1 %v3004_v22  ;;  %v1766_v39 = vld [vmem:[#allocation7 + $0x330] sm:$0xff]  ;;  %v1763_v13 = vld [vmem:[#allocation7 + $0x318] sm:$0xff] }
 0x450   :  { %v1767_v22 = vld [vmem:[#allocation7 + $0x338] sm:$0xff]  ;;  %v3058_v50 = vcombine.high %v1762_v63, %v1766_v39  ;;  %v3057_v58 = vcombine.low %v1762_v63, %v1766_v39 }
 0x451   :  { %v3060_v51 = vcombine.high %v1763_v13, %v1767_v22  ;;  %v3059_v59 = vcombine.low %v1763_v13, %v1767_v22 }
 0x452   :  { %2566 = vmatpush1.bf16.msra.mxu0 %v3001_v52  ;;  %2607 = vmatpush1.bf16.msra.mxu1 %v3003_v55  ;;  %v1770_v52 = vld [vmem:[#allocation7 + $0x350] sm:$0xff] }
 0x453   :  { %2567 = vmatprep.subr.bf16.mxu0 %v3010_v56  ;;  %2608 = vmatprep.subr.bf16.mxu1 %v3012_v57  ;;  %v1774_v55 = vld [vmem:[#allocation7 + $0x370] sm:$0xff]  ;;  %v1771_v56 = vld [vmem:[#allocation7 + $0x358] sm:$0xff] }
 0x454   :  { %v1775_v57 = vld [vmem:[#allocation7 + $0x378] sm:$0xff]  ;;  %v3066_v60 = vcombine.high %v1770_v52, %v1774_v55  ;;  %v3065_v4 = vcombine.low %v1770_v52, %v1774_v55 }
 0x455   :  { %v3068_v61 = vcombine.high %v1771_v56, %v1775_v57  ;;  %v3067_v5 = vcombine.low %v1771_v56, %v1775_v57 }
 0x456   :  { %2568 = vmatpush1.bf16.msra.mxu0 %v3009_v62  ;;  %2609 = vmatpush1.bf16.msra.mxu1 %v3011_v1  ;;  %v1778_v62 = vld [vmem:[#allocation7 + $0x390] sm:$0xff] }
 0x457   :  { %2569 = vmatprep.subr.bf16.mxu0 %v3018_v2  ;;  %2610 = vmatprep.subr.bf16.mxu1 %v3020_v3  ;;  %v1782_v1 = vld [vmem:[#allocation7 + $0x3b0] sm:$0xff]  ;;  %v1779_v2 = vld [vmem:[#allocation7 + $0x398] sm:$0xff] }
 0x458   :  { %v1783_v3 = vld [vmem:[#allocation7 + $0x3b8] sm:$0xff]  ;;  %v3074_v32 = vcombine.high %v1778_v62, %v1782_v1  ;;  %v3073_v17 = vcombine.low %v1778_v62, %v1782_v1 }
 0x459   :  { %v3076_v48 = vcombine.high %v1779_v2, %v1783_v3  ;;  %v3075_v18 = vcombine.low %v1779_v2, %v1783_v3 }
 0x45a   :  { %2570 = vmatpush1.bf16.msra.mxu0 %v3017_v10  ;;  %2611 = vmatpush1.bf16.msra.mxu1 %v3019_v11  ;;  %v1786_v10 = vld [vmem:[#allocation7 + $0x3d0] sm:$0xff] }
 0x45b   :  { %2571 = vmatprep.subr.bf16.mxu0 %v3026_v0  ;;  %2612 = vmatprep.subr.bf16.mxu1 %v3028_v16  ;;  %v1790_v11 = vld [vmem:[#allocation7 + $0x3f0] sm:$0xff]  ;;  %v1787_v0 = vld [vmem:[#allocation7 + $0x3d8] sm:$0xff] }
 0x45c   :  { %v1791_v16 = vld [vmem:[#allocation7 + $0x3f8] sm:$0xff]  ;;  %v3082_v19 = vcombine.high %v1786_v10, %v1790_v11 }
 0x45d   :  { %v3084_v20 = vcombine.high %v1787_v0, %v1791_v16 }
 0x45e   :  { %2572 = vmatpush1.bf16.msra.mxu0 %v3025_v21  ;;  %2613 = vmatpush1.bf16.msra.mxu1 %v3027_v23  ;;  %v3081_v21 = vcombine.low %v1786_v10, %v1790_v11  ;;  %v3083_v23 = vcombine.low %v1787_v0, %v1791_v16 }
 0x45f   :  { %2573 = vmatprep.subr.bf16.mxu0 %v3034_v24  ;;  %2614 = vmatprep.subr.bf16.mxu1 %v3036_v25  ;;  %v68_v24 = vld [vmem:[%s3581_s4 + $0xe] sm:$0xff]  ;;  %s3311_s4 = smov 0.0  }
 0x460   :  { %v1796_v25 = vrot.slane %v68_v24, %v3403_v12  ;;  %v1804_v40 = vrot.slane %v68_v24, %v776_v53  ;;  %v1800_v41 = vrot.slane %v68_v24, %v3409_v15  ;;  %v1808_v42 = vrot.slane %v68_v24, %v780_v54  ;;  %2740 = sst [smem:[#allocation8 + $0x5]] %s3311_s4 }
 0x461   :  { %v2640_v12 = vrot.slane %v3445_v9, 1  ;;  %v2646_v53 = vrot.slane %v3445_v9, 7  ;;  %2742 = sst [smem:[#allocation8 + $0x6]] %s3311_s4 }
 0x462   :  { %2574 = vmatpush1.bf16.msra.mxu0 %v3033_v45  ;;  %2615 = vmatpush1.bf16.msra.mxu1 %v3035_v46  ;;  %2744 = sst [smem:[#allocation8 + $0x7]] %s3311_s4 }
 0x463   :  { %2575 = vmatprep.subr.bf16.mxu0 %v3042_v26  ;;  %2616 = vmatprep.subr.bf16.mxu1 %v3044_v28  ;;  %v2639_v26 = vrot.slane %v3447_v33, 1  ;;  %v2645_v28 = vrot.slane %v3447_v33, 7 }
 0x466   :  { %2576 = vmatpush1.bf16.msra.mxu0 %v3041_v35  ;;  %2617 = vmatpush1.bf16.msra.mxu1 %v3043_v36 }
 0x467   :  { %2577 = vmatprep.subr.bf16.mxu0 %v3050_v37  ;;  %2618 = vmatprep.subr.bf16.mxu1 %v3052_v38 }
 0x46a   :  { %2578 = vmatpush1.bf16.msra.mxu0 %v3049_v43  ;;  %2619 = vmatpush1.bf16.msra.mxu1 %v3051_v49 }
 0x46b   :  { %2579 = vmatprep.subr.bf16.mxu0 %v3058_v50  ;;  %2620 = vmatprep.subr.bf16.mxu1 %v3060_v51 }
 0x46e   :  { %2580 = vmatpush1.bf16.msra.mxu0 %v3057_v58  ;;  %2621 = vmatpush1.bf16.msra.mxu1 %v3059_v59  ;;  %v1812_v58 = vrot.slane %v68_v24, %v784_v6  ;;  %v1820_v59 = vrot.slane %v68_v24, %v792_v47 }
 0x46f   :  { %2581 = vmatprep.subr.bf16.mxu0 %v3066_v60  ;;  %2622 = vmatprep.subr.bf16.mxu1 %v3068_v61  ;;  %v1816_v60 = vrot.slane %v68_v24, %v788_v8  ;;  %v1824_v61 = vrot.slane %v68_v24, %v796_v27 }
 0x472   :  { %2582 = vmatpush1.bf16.msra.mxu0 %v3065_v4  ;;  %2623 = vmatpush1.bf16.msra.mxu1 %v3067_v5 }
 0x473   :  { %2583 = vmatprep.subr.bf16.mxu0 %v3074_v32  ;;  %2624 = vmatprep.subr.bf16.mxu1 %v3076_v48 }
 0x476   :  { %2584 = vmatpush1.bf16.msra.mxu0 %v3073_v17  ;;  %2625 = vmatpush1.bf16.msra.mxu1 %v3075_v18 }
 0x477   :  { %2585 = vmatprep.subr.bf16.mxu0 %v3082_v19  ;;  %2626 = vmatprep.subr.bf16.mxu1 %v3084_v20 }
 0x47a   :  { %2586 = vmatpush1.bf16.msra.mxu0 %v3081_v21  ;;  %2627 = vmatpush1.bf16.msra.mxu1 %v3083_v23 }
 0x47d   :  { %2588 = vmatmul.mubr.bf16.vlgmr.msra.gmra.mrb[12].mxu0 %v3514_v7  ;;  %2629 = vmatmul.mubr.bf16.vlgmr.msra.gmra.mrb[16].mxu1 %v3514_v7 }
 0x510   :  { %v2507_v44 = vpop.f32.mrb[8].mxu0  ;;  %v2548_v45 = vpop.f32.mrb[12].mxu1 }
 0x511   :  { %v2508_v46 = vadd.f32 %v2507_v44, %v1796_v25  ;;  %v2549_v7 = vadd.f32 %v2548_v45, %v1804_v40  ;;  %v2509_v29 = vpop.f32.mrb[9].mxu0  ;;  %v2550_v30 = vpop.f32.mrb[13].mxu1 }
 0x512   :  { %v2510_v31 = vadd.f32 %v2509_v29, %v1800_v41  ;;  %v2551_v34 = vadd.f32 %v2550_v30, %v1808_v42  ;;  %v2511_v15 = vpop.f32.mrb[10].mxu0  ;;  %v2552_v35 = vpop.f32.mrb[14].mxu1 }
 0x513   :  { %v2643_v36 = vsub.f32 %v2508_v46, %v2639_v26  ;;  %v2649_v54 = vsub.f32 %v2549_v7, %v2645_v28  ;;  %v2512_v37 = vpop.f32.mrb[11].mxu0  ;;  %v2553_v38 = vpop.f32.mrb[15].mxu1 }
 0x514   :  { %v2644_v63 = vsub.f32 %v2510_v31, %v2640_v12  ;;  %v2650_v39 = vsub.f32 %v2551_v34, %v2646_v53 }
 0x515   :  { %v2670_v13 = vmul.f32 %v2649_v54, %v2649_v54  ;;  %v2651_v22 = vmul.f32 %v2643_v36, %v2643_v36 }
 0x516   :  { %v2671_v43 = vmul.f32 %v2650_v39, %v2650_v39  ;;  %v2652_v33 = vmul.f32 %v2644_v63, %v2644_v63 }
 0x517   :  { %v2674_v49 = vrot.slane %v2670_v13, 1  ;;  %v2653_v50 = vsel %vm1654_vm1, %v2651_v22, 0.0 }
 0x518   :  { %v2675_v51 = vrot.slane %v2671_v43, 1  ;;  %v2654_v52 = vsel %vm1654_vm1, %v2652_v33, 0.0 }
 0x519   :  { %v2655_v55 = vadd.f32 %v2654_v52, %v2653_v50  ;;  %v2678_v9 = vsel %vm1654_vm1, %v2674_v49, 0.0 }
 0x51a   :  { %v2679_v56 = vsel %vm1654_vm1, %v2675_v51, 0.0 }
 0x51b   :  { %2656 = vadd.xlane.f32.xlu1 %v2655_v55  ;;  %v2680_v57 = vadd.f32 %v2679_v56, %v2678_v9 }
 0x51f   :  { %2681 = vadd.xlane.f32.xlu1 %v2680_v57 }
 0x550   :  { %v2589_v62 = vpop.f32.mrb[12].mxu0  ;;  %v2630_v1 = vpop.f32.mrb[16].mxu1 }
 0x551   :  { %v2590_v2 = vadd.f32 %v2589_v62, %v1812_v58  ;;  %v2631_v3 = vadd.f32 %v2630_v1, %v1820_v59  ;;  %v2591_v4 = vpop.f32.mrb[13].mxu0  ;;  %v2632_v5 = vpop.f32.mrb[17].mxu1 }
 0x552   :  { %v2592_v32 = vadd.f32 %v2591_v4, %v1816_v60  ;;  %v2633_v48 = vadd.f32 %v2632_v5, %v1824_v61  ;;  %v2593_v10 = vpop.f32.mrb[14].mxu0  ;;  %v2634_v11 = vpop.f32.mrb[18].mxu1 }
 0x553   :  { %v2702_v6 = vrot.slane %v2590_v2, 2  ;;  %v2708_v0 = vrot.slane %v2631_v3, 2  ;;  %v2594_v16 = vpop.f32.mrb[15].mxu0  ;;  %v2635_v47 = vpop.f32.mrb[19].mxu1 }
 0x554   :  { %v2703_v17 = vrot.slane %v2592_v32, 2  ;;  %v2709_v18 = vrot.slane %v2633_v48, 2 }
 0x555   :  { %v2712_v8 = vsel %vm1654_vm1, %v2702_v6, %v2708_v0 }
 0x556   :  { %v2713_v14 = vsel %vm1654_vm1, %v2703_v17, %v2709_v18 }
 0x5a8   :  { %v2657_v27 = vpop.xlane.xlu1 %2656 }
 0x5a9   :  { %v2658_v19 = vrot.slane %v2657_v27, 4 }
 0x5ab   :  { %v2659_v20 = vadd.f32 %v2658_v19, %v2657_v27 }
 0x5ac   :  { %v2682_v21 = vpop.xlane.xlu1 %2681 }
 0x5ad   :  { %v2660_v23 = vrot.slane %v2659_v20, 2  ;;  %v2683_v24 = vrot.slane %v2682_v21, 4 }
 0x5af   :  { %v2684_v25 = vadd.f32 %v2683_v24, %v2682_v21  ;;  %v2661_v40 = vadd.f32 %v2660_v23, %v2659_v20 }
 0x5b1   :  { %v2685_v41 = vrot.slane %v2684_v25, 2  ;;  %v2662_v42 = vrot.slane %v2661_v40, 1 }
 0x5b3   :  { %v2686_v44 = vadd.f32 %v2685_v41, %v2684_v25  ;;  %v2663_v45 = vadd.f32 %v2662_v42, %v2661_v40 }
 0x5b5   :  { %3092 = vpush %v2663_v45  ;;  %v2687_v46 = vrot.slane %v2686_v44, 1 }
 0x5b7   :  { %v2688_v26 = vadd.f32 %v2687_v46, %v2686_v44 }
 0x5b9   :  { %3094 = vpush %v2688_v26 }
 0x5e6   :  { %s3093_s21 = spop %3092 }
 0x5e7   :  { %s2667_s22 = smul.f32 0.00390625, %s3093_s21 }
 0x5e9   :  { %s2668_s23 = smax.f32 %s3311_s4, %s2667_s22 }
 0x5ea   :  { %s2669_s24 = smin.f32 %s3312_s2, %s2668_s23  ;;  %s3095_s25 = spop %3094 }
 0x5eb   :  { %s2692_s26 = smul.f32 0.00390625, %s3095_s25  ;;  %2730 = sst [smem:[#allocation8]] %s2669_s24 }
 0x5ec   :  { %s2695_s27 = sadd.f32 1.0, %s2669_s24 }
 0x5ed   :  { %s2693_s28 = smax.f32 %s3311_s4, %s2692_s26 }
 0x5ee   :  { %s2694_s29 = smin.f32 %s3312_s2, %s2693_s28 }
 0x5ef   :  { %s2696_s30 = sadd.f32 %s2695_s27, %s2694_s29 }
 0x5f0   :  { %2732 = sst [smem:[#allocation8 + $0x1]] %s2694_s29 }
 0x5f1   :  { %v2697_v7 = vstv %s2696_s30 }
 0x5f2   :  { %3219 = vrcp.f32 %v2697_v7 }
 0x5fc   :  { %v3220_v28 = vpop.eup %3219 }
 0x5fd   :  { %3096 = vpush %v3220_v28 }
 0x62e   :  { %s3097_s9 = spop %3096 }
 0x62f   :  { %v2714_v29 = vstv %s3097_s9  ;;  %2734 = sst [smem:[#allocation8 + $0x2]] %s3097_s9 }
 0x630   :  { %v2715_v30 = vmul.f32 %v2714_v29, %v2712_v8  ;;  %v2716_v31 = vmul.f32 %v2714_v29, %v2713_v14 }
 0x631   :  { %3296 = shalt.err (!%p3293_p12)
}
 0x632   :  { %s3313_s8 = smov [#allocation8]   ;;  %v2719_v12 = vcombine.low %v2715_v30, %v2716_v31 }
 0x633   :  { %2754 = dma.smem_to_hbm %s3313_s8, 16, %s3583_s6, [#allocation4]  }
 0x634   :  { %3085 = vst.sshfl [vmem:[%s3582_s5] sm:$0x33 pattern:$0x76325410] %v2719_v12 }
 0x635   :  { %3301 = dma.done.wait [#allocation4], 16  }
 0x636   :  { %3302 = vsyncadd [#allocation4], 4294967280 }
 0x637   :  { %2760 = sfence }
 0x638   :  { %2761 = vsyncpa [#allocation3], 1 }
 0x639   :  { %2762 = vsyncpa [#allocation6], 1 }
 0x63a   :  { %2763 = vsyncpa [#allocation4], 1 }

</bundles_post_ra>
